<compile_context>
chip_gen: v5e
topology: v5e:2x2
jax: 0.10.0
libtpu: 0.0.40
codegen_flags: <defaults>
</compile_context>

<pallas_src>
import functools

import jax
import jax.numpy as jnp
import numpy as np
from jax.experimental import pallas as pl
from jax.experimental.pallas import tpu as pltpu


def _round_up(x, m):
    return ((x + m - 1) // m) * m


# ---------------------------------------------------------------------------
# Pallas kernel: fused multi-layer bidirectional graph propagation.
# ---------------------------------------------------------------------------
def _lgcl_prop_kernel(a_ref, eu_ref, ei_ref,
                      pu_out, pi_out, zu_out, zi_out,
                      cur_u, cur_i,
                      *, tm, tn, n_layers):
    """grid = (n_layers, M // tm, N // tn); layer axis outermost (sequential).

    Per layer l:
        Z_u = A   @ E_i^(l)
        Z_i = A^T @ E_u^(l)
    with each (tm, tn) A-tile reused for BOTH directions.  Kernel outputs:
        pu_out = sum_{l=1..L-1} E_u^(l)     (prefix sum minus the layer-0 term)
        zu_out = E_u^(L)                    (final-layer Z, doubles as the
                                             per-layer f32 accumulator)
    and the item-side counterparts.  E_u = user_emb + pu_out + zu_out is
    computed outside the kernel.
    """
    l = pl.program_id(0)
    i = pl.program_id(1)
    j = pl.program_id(2)
    ni = pl.num_programs(1)
    nj = pl.num_programs(2)

    row = pl.multiple_of(i * tm, tm)
    col = pl.multiple_of(j * tn, tn)

    # ---- layer-0 init: seed bf16 carries from the streamed embedding blocks
    #      and zero the prefix-sum outputs (per tile, no full-table pass). ---
    @pl.when((l == 0) & (j == 0))
    def _init_user_block():
        cur_u[pl.ds(row, tm), :] = eu_ref[...]
        pu_out[pl.ds(row, tm), :] = jnp.zeros((tm, pu_out.shape[1]),
                                              pu_out.dtype)

    @pl.when((l == 0) & (i == 0))
    def _init_item_block():
        cur_i[pl.ds(col, tn), :] = ei_ref[...]
        pi_out[pl.ds(col, tn), :] = jnp.zeros((tn, pi_out.shape[1]),
                                              pi_out.dtype)

    # ---- zero this layer's partial sums on first touch of each tile -------
    @pl.when(j == 0)
    def _zero_zu():
        zu_out[pl.ds(row, tm), :] = jnp.zeros((tm, zu_out.shape[1]),
                                              zu_out.dtype)

    @pl.when(i == 0)
    def _zero_zi():
        zi_out[pl.ds(col, tn), :] = jnp.zeros((tn, zi_out.shape[1]),
                                              zi_out.dtype)

    # ---- hot path: one A tile feeds both propagation directions -----------
    # TODO(synk): int8 (v5e/v6e) / fp8 (v7x) A with a global scale would
    # halve the HBM-bound A stream; kept bf16 for reference-level accuracy.
    a_blk = a_ref[...]                           # (tm, tn) bf16
    ei_blk = cur_i[pl.ds(col, tn), :]            # (tn, D)  bf16
    eu_blk = cur_u[pl.ds(row, tm), :]            # (tm, D)  bf16

    zu_out[pl.ds(row, tm), :] += jnp.dot(
        a_blk, ei_blk, preferred_element_type=jnp.float32)
    # TODO(synk): confirm this lowers to a transposed-LHS vmatmul on v7x (no
    # explicit 2*tm*tn-byte tile transpose); restructure if the dump shows one.
    zi_out[pl.ds(col, tn), :] += jax.lax.dot_general(
        a_blk, eu_blk, (((0,), (0,)), ((), ())),      # A_tile^T @ E_u_tile
        preferred_element_type=jnp.float32)

    # ---- distributed per-tile layer finalization (no whole-table epilogue)
    not_last_layer = l < n_layers - 1

    # zu_out[row block i] is complete once the inner j loop ends; cur_u[row i]
    # is not read again within this layer after this step's matmuls above.
    @pl.when((j == nj - 1) & not_last_layer)
    def _finish_user_row_block():
        zu = zu_out[pl.ds(row, tm), :]
        pu_out[pl.ds(row, tm), :] += zu
        cur_u[pl.ds(row, tm), :] = zu.astype(cur_u.dtype)

    # zi_out[col block j] is complete once i reaches ni-1.
    @pl.when((i == ni - 1) & not_last_layer)
    def _finish_item_col_block():
        zi = zi_out[pl.ds(col, tn), :]
        pi_out[pl.ds(col, tn), :] += zi
        cur_i[pl.ds(col, tn), :] = zi.astype(cur_i.dtype)


def lgcl_propagate_pallas(norm_adj, user_emb, item_emb, n_layers,
                          *, tm=1024, tn=1024):
    """Returns (P_u - E_u^(0), P_i - E_i^(0), E_u^(L), E_i^(L)) sliced to (M, N).

    A is streamed in bf16 tiles; prefix sums / final-layer Z stay VMEM
    resident (~10 B per node-feature element).
    """
    M, D = user_emb.shape
    N = item_emb.shape[0]
    assert norm_adj.shape == (M, N)
    assert n_layers >= 1

    # Tile sizes: tm multiple of 8 (sublanes), tn multiple of 128 (lanes);
    # shrink for small problems, pad the arrays up to the tile grid otherwise.
    tm = _round_up(max(8, min(tm, _round_up(M, 8))), 8)
    tn = _round_up(max(128, min(tn, _round_up(N, 128))), 128)
    Mp = _round_up(M, tm)
    Np = _round_up(N, tn)

    # Zero padding is an exact no-op for the propagation math.
    adj = jnp.pad(norm_adj, ((0, Mp - M), (0, Np - N))).astype(jnp.bfloat16)
    eu0 = jnp.pad(user_emb, ((0, Mp - M), (0, 0))).astype(jnp.bfloat16)
    ei0 = jnp.pad(item_emb, ((0, Np - N), (0, 0))).astype(jnp.bfloat16)

    grid = (n_layers, Mp // tm, Np // tn)
    kernel = functools.partial(_lgcl_prop_kernel, tm=tm, tn=tn,
                               n_layers=n_layers)

    full_u = pl.BlockSpec((Mp, D), lambda l, i, j: (0, 0))
    full_i = pl.BlockSpec((Np, D), lambda l, i, j: (0, 0))

    grid_spec = pltpu.PrefetchScalarGridSpec(
        num_scalar_prefetch=0,
        grid=grid,
        in_specs=[
            pl.BlockSpec((tm, tn), lambda l, i, j: (i, j)),   # A (bf16) streamed
            pl.BlockSpec((tm, D), lambda l, i, j: (i, 0)),    # user seed (bf16)
            pl.BlockSpec((tn, D), lambda l, i, j: (j, 0)),    # item seed (bf16)
        ],
        out_specs=[full_u, full_i, full_u, full_i],
        scratch_shapes=[
            pltpu.VMEM((Mp, D), jnp.bfloat16),   # cur_u (layer operand carry)
            pltpu.VMEM((Np, D), jnp.bfloat16),   # cur_i
        ],
    )

    out_shape = (
        jax.ShapeDtypeStruct((Mp, D), jnp.float32),   # pu = sum_{1<=l<L} E_u^(l)
        jax.ShapeDtypeStruct((Np, D), jnp.float32),   # pi
        jax.ShapeDtypeStruct((Mp, D), jnp.float32),   # zu = E_u^(L)
        jax.ShapeDtypeStruct((Np, D), jnp.float32),   # zi = E_i^(L)
    )

    # VMEM budget: resident outputs/carries + double-buffered streamed tiles.
    resident = ((Mp + Np) * D * (4 + 4 + 2)          # pu/pi + zu/zi + bf16 carry
                + 2 * tm * tn * 2                    # A double buffer
                + 2 * (tm + tn) * D * 2)             # embedding seed blocks
    try:
        vmem_cap = int(pltpu.get_tpu_info().vmem_capacity_bytes)
    except Exception:
        vmem_cap = 64 * 1024 * 1024                  # conservative (v7x)
    vmem_limit = int(min(vmem_cap - (4 << 20),
                         max(32 << 20, resident + (16 << 20))))

    flops = 4 * n_layers * Mp * Np * D               # two matmuls per A tile
    bytes_accessed = (n_layers * Mp * Np * 2         # A streamed once per layer
                      + n_layers * (Mp + Np) * D * 2
                      + 4 * (Mp + Np) * D * 4)

    # All grid axes "arbitrary": the VMEM-resident accumulators / carries are
    # shared across every grid step, so no axis may be megacore-sharded.
    # TODO(synk): v7x dual-TensorCore split (core_map + per-core Z_i partials
    # reduced behind a core_barrier) not implemented.
    pu, pi, zu, zi = pl.pallas_call(
        kernel,
        grid_spec=grid_spec,
        out_shape=out_shape,
        compiler_params=pltpu.CompilerParams(
            dimension_semantics=("arbitrary", "arbitrary", "arbitrary"),
            vmem_limit_bytes=vmem_limit),
        cost_estimate=pl.CostEstimate(flops=flops, transcendentals=0,
                                      bytes_accessed=bytes_accessed),
    )(adj, eu0, ei0)

    return pu[:M], pi[:N], zu[:M], zi[:N]


# ---------------------------------------------------------------------------
# Plain-JAX glue: randomized SVD + low-rank branch + gathers.
# ---------------------------------------------------------------------------
def randomized_svd(a, q, key, n_iter=2):
    """Rank-q randomized SVD (same algorithm family as torch.svd_lowrank)."""
    # TODO(synk): not bit-identical to torch.svd_lowrank (different random
    # projection), but the same randomized subspace-iteration scheme.
    n = a.shape[1]
    omega = jax.random.normal(key, (n, q), dtype=a.dtype)
    y = a @ omega
    for _ in range(n_iter):
        y, _ = jnp.linalg.qr(y)
        y = a @ (a.T @ y)
    q_mat, _ = jnp.linalg.qr(y)
    b = q_mat.T @ a                                  # (q, N)
    ub, s, vt = jnp.linalg.svd(b, full_matrices=False)
    return q_mat @ ub, s, vt.T                       # U (M,q), S (q,), V (N,q)


def lgcl_forward(norm_adj, user_emb, item_emb, users, items, q, n_layers,
                 *, svd_key, tm=1024, tn=1024):
    """Full LGCLEncoder.forward."""
    svd_u, svd_s, svd_v = randomized_svd(norm_adj, q, svd_key)
    u_mul_s = svd_u * svd_s[None, :]                 # U @ diag(S)   (M, q)
    v_mul_s = svd_v * svd_s[None, :]                 # V @ diag(S)   (N, q)

    pu_k, pi_k, zu, zi = lgcl_propagate_pallas(
        norm_adj, user_emb, item_emb, n_layers, tm=tm, tn=tn)

    # P = sum_{l=0..L-1} E^(l)  (layer-0 term added back here),  E = P + E^(L).
    P_u = user_emb + pu_k
    P_i = item_emb + pi_k
    E_u = P_u + zu
    E_i = P_i + zi

    # Low-rank SVD propagation hoisted out of the layer loop by linearity:
    #   sum_l (U S)(V^T E_i^(l)) = (U S)(V^T sum_{l<L} E_i^(l)).
    # q is tiny (e.g. 8) -> run once in plain XLA instead of wasting MXU lanes.
    G_u = jnp.dot(u_mul_s, jnp.dot(svd_v.T, P_i))
    G_i = jnp.dot(v_mul_s, jnp.dot(svd_u.T, P_u))

    return (jnp.take(E_u, users, axis=0), jnp.take(E_i, items, axis=0),
            jnp.take(G_u, users, axis=0), jnp.take(G_i, items, axis=0))


def lgcl_reference(norm_adj, user_emb, item_emb, users, items,
                   u_mul_s, v_mul_s, ut, vt, n_layers):
    """Pure-JAX mirror of the PyTorch loop (same bf16 operand casts)."""
    a = norm_adj.astype(jnp.bfloat16)
    eu_list, ei_list = [user_emb], [item_emb]
    gu_list, gi_list = [], []
    for layer in range(n_layers):
        ei_b = ei_list[layer].astype(jnp.bfloat16)
        eu_b = eu_list[layer].astype(jnp.bfloat16)
        z_u = jnp.dot(a, ei_b, preferred_element_type=jnp.float32)
        z_i = jnp.dot(a.T, eu_b, preferred_element_type=jnp.float32)
        gu_list.append(jnp.dot(u_mul_s, jnp.dot(vt, ei_list[layer])))
        gi_list.append(jnp.dot(v_mul_s, jnp.dot(ut, eu_list[layer])))
        eu_list.append(z_u)
        ei_list.append(z_i)
    E_u, E_i = sum(eu_list), sum(ei_list)
    G_u, G_i = sum(gu_list), sum(gi_list)
    return E_u[users], E_i[items], G_u[users], G_i[items]


def _xavier_uniform(key, shape):
    fan_in, fan_out = shape
    bound = jnp.sqrt(6.0 / (fan_in + fan_out))
    return jax.random.uniform(key, shape, jnp.float32, -bound, bound)


if __name__ == "__main__":
    user_count = 250      # deliberately NOT a multiple of the tile size
    item_count = 372      # exercises the cdiv/padding path
    emb_size = 128
    q_rank = 8
    n_layers = 2
    batch = 8
    tile = 128    # small tiles so the demo exercises a real multi-tile grid;
                  # defaults (1024) are for production-sized adjacencies.

    key = jax.random.PRNGKey(0)
    k_adj, k_mask, k_u, k_i, k_us, k_is, k_svd = jax.random.split(key, 7)

    # Synthetic "normalized adjacency": sparse-ish nonnegative dense matrix.
    adj_vals = jax.random.uniform(k_adj, (user_count, item_count), jnp.float32)
    adj_mask = jax.random.uniform(k_mask, (user_count, item_count)) < 0.05
    norm_adj = jnp.where(adj_mask, adj_vals, 0.0)
    deg_u = jnp.maximum(norm_adj.sum(axis=1, keepdims=True), 1e-8)
    deg_i = jnp.maximum(norm_adj.sum(axis=0, keepdims=True), 1e-8)
    norm_adj = norm_adj / jnp.sqrt(deg_u) / jnp.sqrt(deg_i)

    # Deterministic xavier-uniform parameter init (matches __init__ shapes).
    user_emb = _xavier_uniform(k_u, (user_count, emb_size))
    item_emb = _xavier_uniform(k_i, (item_count, emb_size))

    users = jax.random.randint(k_us, (batch,), 0, user_count)
    items = jax.random.randint(k_is, (batch,), 0, item_count)

    outs = lgcl_forward(norm_adj, user_emb, item_emb, users, items,
                        q_rank, n_layers, svd_key=k_svd, tm=tile, tn=tile)
    outs = jax.block_until_ready(outs)

    ue, ie, gue, gie = outs
    assert ue.shape == (batch, emb_size)
    assert ie.shape == (batch, emb_size)
    assert gue.shape == (batch, emb_size)
    assert gie.shape == (batch, emb_size)

    # Correctness check against a pure-JAX mirror (same SVD factors, same
    # bf16 operand casts as the kernel path).
    svd_u, svd_s, svd_v = randomized_svd(norm_adj, q_rank, k_svd)
    refs = lgcl_reference(norm_adj, user_emb, item_emb, users, items,
                          svd_u * svd_s[None, :], svd_v * svd_s[None, :],
                          svd_u.T, svd_v.T, n_layers)
    for got, want in zip(outs, refs):
        np.testing.assert_allclose(np.asarray(got), np.asarray(want),
                                   rtol=2e-2, atol=5e-4)

    print("KERNEL_OK")
</pallas_src>

<mosaic_0001>
module attributes {stable_mosaic.version = 11 : i64} {
  func.func @_lgcl_prop_kernel(%arg0: i32, %arg1: i32, %arg2: i32, %arg3: memref<128x128xbf16, #tpu.memory_space<vmem>>, %arg4: memref<128x128xbf16, #tpu.memory_space<vmem>>, %arg5: memref<128x128xbf16, #tpu.memory_space<vmem>>, %arg6: memref<256x128xf32, #tpu.memory_space<vmem>>, %arg7: memref<384x128xf32, #tpu.memory_space<vmem>>, %arg8: memref<256x128xf32, #tpu.memory_space<vmem>>, %arg9: memref<384x128xf32, #tpu.memory_space<vmem>>, %arg10: memref<256x128xbf16, #tpu.memory_space<vmem>>, %arg11: memref<384x128xbf16, #tpu.memory_space<vmem>>) attributes {dimension_semantics = [#tpu.dimension_semantics<arbitrary>, #tpu.dimension_semantics<arbitrary>, #tpu.dimension_semantics<arbitrary>], iteration_bounds = array<i64: 2, 2, 3>, scalar_prefetch = 0 : i64, scratch_operands = 2 : i64, tpu.core_type = #tpu.core_type<tc>, window_params = [{transform_indices = @transform_0, window_bounds = array<i64: 128, 128>}, {transform_indices = @transform_1, window_bounds = array<i64: 128, 128>}, {transform_indices = @transform_2, window_bounds = array<i64: 128, 128>}, {pipeline_mode = #tpu.pipeline_mode<synchronous>, transform_indices = @transform_3, window_bounds = array<i64: 256, 128>}, {pipeline_mode = #tpu.pipeline_mode<synchronous>, transform_indices = @transform_4, window_bounds = array<i64: 384, 128>}, {pipeline_mode = #tpu.pipeline_mode<synchronous>, transform_indices = @transform_5, window_bounds = array<i64: 256, 128>}, {pipeline_mode = #tpu.pipeline_mode<synchronous>, transform_indices = @transform_6, window_bounds = array<i64: 384, 128>}]} {
    %c128_i32 = arith.constant 128 : i32
    %0 = arith.muli %arg1, %c128_i32 : i32
    %1 = tpu.assume_multiple %0, 128 : i32
    %c128_i32_0 = arith.constant 128 : i32
    %2 = arith.muli %arg2, %c128_i32_0 : i32
    %3 = tpu.assume_multiple %2, 128 : i32
    %c0_i32 = arith.constant 0 : i32
    %4 = arith.cmpi eq, %arg0, %c0_i32 : i32
    %c0_i32_1 = arith.constant 0 : i32
    %5 = arith.cmpi eq, %arg2, %c0_i32_1 : i32
    %6 = arith.andi %4, %5 : i1
    %7 = arith.extui %6 : i1 to i32
    %c0_i32_2 = arith.constant 0 : i32
    %8 = arith.cmpi ne, %7, %c0_i32_2 : i32
    scf.if %8 {
      %c0_21 = arith.constant 0 : index
      %c0_22 = arith.constant 0 : index
      %46 = vector.load %arg4[%c0_21, %c0_22] : memref<128x128xbf16, #tpu.memory_space<vmem>>, vector<128x128xbf16>
      %47 = arith.index_cast %1 : i32 to index
      %c0_23 = arith.constant 0 : index
      %48 = vector.load %arg10[%47, %c0_23] : memref<256x128xbf16, #tpu.memory_space<vmem>>, vector<128x128xbf16>
      tpu.vector_store %arg10[%47, %c0_23], %46 {strides = array<i32>} : memref<256x128xbf16, #tpu.memory_space<vmem>>, vector<128x128xbf16>,
      %cst_24 = arith.constant 0.000000e+00 : f32
      %49 = vector.broadcast %cst_24 : f32 to vector<128x128xf32>
      %50 = arith.index_cast %1 : i32 to index
      %c0_25 = arith.constant 0 : index
      %51 = vector.load %arg6[%50, %c0_25] : memref<256x128xf32, #tpu.memory_space<vmem>>, vector<128x128xf32>
      tpu.vector_store %arg6[%50, %c0_25], %49 {strides = array<i32>} : memref<256x128xf32, #tpu.memory_space<vmem>>, vector<128x128xf32>,
    } else {
    }
    %c0_i32_3 = arith.constant 0 : i32
    %9 = arith.cmpi eq, %arg0, %c0_i32_3 : i32
    %c0_i32_4 = arith.constant 0 : i32
    %10 = arith.cmpi eq, %arg1, %c0_i32_4 : i32
    %11 = arith.andi %9, %10 : i1
    %12 = arith.extui %11 : i1 to i32
    %c0_i32_5 = arith.constant 0 : i32
    %13 = arith.cmpi ne, %12, %c0_i32_5 : i32
    scf.if %13 {
      %c0_21 = arith.constant 0 : index
      %c0_22 = arith.constant 0 : index
      %46 = vector.load %arg5[%c0_21, %c0_22] : memref<128x128xbf16, #tpu.memory_space<vmem>>, vector<128x128xbf16>
      %47 = arith.index_cast %3 : i32 to index
      %c0_23 = arith.constant 0 : index
      %48 = vector.load %arg11[%47, %c0_23] : memref<384x128xbf16, #tpu.memory_space<vmem>>, vector<128x128xbf16>
      tpu.vector_store %arg11[%47, %c0_23], %46 {strides = array<i32>} : memref<384x128xbf16, #tpu.memory_space<vmem>>, vector<128x128xbf16>,
      %cst_24 = arith.constant 0.000000e+00 : f32
      %49 = vector.broadcast %cst_24 : f32 to vector<128x128xf32>
      %50 = arith.index_cast %3 : i32 to index
      %c0_25 = arith.constant 0 : index
      %51 = vector.load %arg7[%50, %c0_25] : memref<384x128xf32, #tpu.memory_space<vmem>>, vector<128x128xf32>
      tpu.vector_store %arg7[%50, %c0_25], %49 {strides = array<i32>} : memref<384x128xf32, #tpu.memory_space<vmem>>, vector<128x128xf32>,
    } else {
    }
    %c0_i32_6 = arith.constant 0 : i32
    %14 = arith.cmpi eq, %arg2, %c0_i32_6 : i32
    %15 = arith.extui %14 : i1 to i32
    %c0_i32_7 = arith.constant 0 : i32
    %16 = arith.cmpi ne, %15, %c0_i32_7 : i32
    scf.if %16 {
      %cst_21 = arith.constant 0.000000e+00 : f32
      %46 = vector.broadcast %cst_21 : f32 to vector<128x128xf32>
      %47 = arith.index_cast %1 : i32 to index
      %c0_22 = arith.constant 0 : index
      %48 = vector.load %arg8[%47, %c0_22] : memref<256x128xf32, #tpu.memory_space<vmem>>, vector<128x128xf32>
      tpu.vector_store %arg8[%47, %c0_22], %46 {strides = array<i32>} : memref<256x128xf32, #tpu.memory_space<vmem>>, vector<128x128xf32>,
    } else {
    }
    %c0_i32_8 = arith.constant 0 : i32
    %17 = arith.cmpi eq, %arg1, %c0_i32_8 : i32
    %18 = arith.extui %17 : i1 to i32
    %c0_i32_9 = arith.constant 0 : i32
    %19 = arith.cmpi ne, %18, %c0_i32_9 : i32
    scf.if %19 {
      %cst_21 = arith.constant 0.000000e+00 : f32
      %46 = vector.broadcast %cst_21 : f32 to vector<128x128xf32>
      %47 = arith.index_cast %3 : i32 to index
      %c0_22 = arith.constant 0 : index
      %48 = vector.load %arg9[%47, %c0_22] : memref<384x128xf32, #tpu.memory_space<vmem>>, vector<128x128xf32>
      tpu.vector_store %arg9[%47, %c0_22], %46 {strides = array<i32>} : memref<384x128xf32, #tpu.memory_space<vmem>>, vector<128x128xf32>,
    } else {
    }
    %c0 = arith.constant 0 : index
    %c0_10 = arith.constant 0 : index
    %20 = vector.load %arg3[%c0, %c0_10] : memref<128x128xbf16, #tpu.memory_space<vmem>>, vector<128x128xbf16>
    %21 = arith.index_cast %3 : i32 to index
    %c0_11 = arith.constant 0 : index
    %22 = vector.load %arg11[%21, %c0_11] : memref<384x128xbf16, #tpu.memory_space<vmem>>, vector<128x128xbf16>
    %23 = arith.index_cast %1 : i32 to index
    %c0_12 = arith.constant 0 : index
    %24 = vector.load %arg10[%23, %c0_12] : memref<256x128xbf16, #tpu.memory_space<vmem>>, vector<128x128xbf16>
    %25 = arith.index_cast %1 : i32 to index
    %c0_13 = arith.constant 0 : index
    %26 = vector.load %arg8[%25, %c0_13] : memref<256x128xf32, #tpu.memory_space<vmem>>, vector<128x128xf32>
    %cst = arith.constant dense<0.000000e+00> : vector<128x128xf32>
    %27 = tpu.matmul %20, %22, %cst {dimension_numbers = #tpu.dot_dimension_numbers<[1], [0], [0], [1], [0, 0, 1, 1], [], []>} : vector<128x128xbf16>, vector<128x128xbf16>, vector<128x128xf32> -> vector<128x128xf32>
    %28 = arith.addf %26, %27 : vector<128x128xf32>
    %29 = arith.index_cast %1 : i32 to index
    %c0_14 = arith.constant 0 : index
    %30 = vector.load %arg8[%29, %c0_14] : memref<256x128xf32, #tpu.memory_space<vmem>>, vector<128x128xf32>
    tpu.vector_store %arg8[%29, %c0_14], %28 {strides = array<i32>} : memref<256x128xf32, #tpu.memory_space<vmem>>, vector<128x128xf32>,
    %31 = arith.index_cast %3 : i32 to index
    %c0_15 = arith.constant 0 : index
    %32 = vector.load %arg9[%31, %c0_15] : memref<384x128xf32, #tpu.memory_space<vmem>>, vector<128x128xf32>
    %cst_16 = arith.constant dense<0.000000e+00> : vector<128x128xf32>
    %33 = tpu.matmul %20, %24, %cst_16 {dimension_numbers = #tpu.dot_dimension_numbers<[0], [0], [1], [1], [0, 1, 1, 1], [], []>} : vector<128x128xbf16>, vector<128x128xbf16>, vector<128x128xf32> -> vector<128x128xf32>
    %34 = arith.addf %32, %33 : vector<128x128xf32>
    %35 = arith.index_cast %3 : i32 to index
    %c0_17 = arith.constant 0 : index
    %36 = vector.load %arg9[%35, %c0_17] : memref<384x128xf32, #tpu.memory_space<vmem>>, vector<128x128xf32>
    tpu.vector_store %arg9[%35, %c0_17], %34 {strides = array<i32>} : memref<384x128xf32, #tpu.memory_space<vmem>>, vector<128x128xf32>,
    %c1_i32 = arith.constant 1 : i32
    %37 = arith.cmpi slt, %arg0, %c1_i32 : i32
    %c2_i32 = arith.constant 2 : i32
    %38 = arith.cmpi eq, %arg2, %c2_i32 : i32
    %39 = arith.andi %38, %37 : i1
    %40 = arith.extui %39 : i1 to i32
    %c0_i32_18 = arith.constant 0 : i32
    %41 = arith.cmpi ne, %40, %c0_i32_18 : i32
    scf.if %41 {
      %46 = arith.index_cast %1 : i32 to index
      %c0_21 = arith.constant 0 : index
      %47 = vector.load %arg8[%46, %c0_21] : memref<256x128xf32, #tpu.memory_space<vmem>>, vector<128x128xf32>
      %48 = arith.index_cast %1 : i32 to index
      %c0_22 = arith.constant 0 : index
      %49 = vector.load %arg6[%48, %c0_22] : memref<256x128xf32, #tpu.memory_space<vmem>>, vector<128x128xf32>
      %50 = arith.addf %49, %47 : vector<128x128xf32>
      %51 = arith.index_cast %1 : i32 to index
      %c0_23 = arith.constant 0 : index
      %52 = vector.load %arg6[%51, %c0_23] : memref<256x128xf32, #tpu.memory_space<vmem>>, vector<128x128xf32>
      tpu.vector_store %arg6[%51, %c0_23], %50 {strides = array<i32>} : memref<256x128xf32, #tpu.memory_space<vmem>>, vector<128x128xf32>,
      %53 = arith.truncf %47 : vector<128x128xf32> to vector<128x128xbf16>
      %54 = arith.index_cast %1 : i32 to index
      %c0_24 = arith.constant 0 : index
      %55 = vector.load %arg10[%54, %c0_24] : memref<256x128xbf16, #tpu.memory_space<vmem>>, vector<128x128xbf16>
      tpu.vector_store %arg10[%54, %c0_24], %53 {strides = array<i32>} : memref<256x128xbf16, #tpu.memory_space<vmem>>, vector<128x128xbf16>,
    } else {
    }
    %c1_i32_19 = arith.constant 1 : i32
    %42 = arith.cmpi eq, %arg1, %c1_i32_19 : i32
    %43 = arith.andi %42, %37 : i1
    %44 = arith.extui %43 : i1 to i32
    %c0_i32_20 = arith.constant 0 : i32
    %45 = arith.cmpi ne, %44, %c0_i32_20 : i32
    scf.if %45 {
      %46 = arith.index_cast %3 : i32 to index
      %c0_21 = arith.constant 0 : index
      %47 = vector.load %arg9[%46, %c0_21] : memref<384x128xf32, #tpu.memory_space<vmem>>, vector<128x128xf32>
      %48 = arith.index_cast %3 : i32 to index
      %c0_22 = arith.constant 0 : index
      %49 = vector.load %arg7[%48, %c0_22] : memref<384x128xf32, #tpu.memory_space<vmem>>, vector<128x128xf32>
      %50 = arith.addf %49, %47 : vector<128x128xf32>
      %51 = arith.index_cast %3 : i32 to index
      %c0_23 = arith.constant 0 : index
      %52 = vector.load %arg7[%51, %c0_23] : memref<384x128xf32, #tpu.memory_space<vmem>>, vector<128x128xf32>
      tpu.vector_store %arg7[%51, %c0_23], %50 {strides = array<i32>} : memref<384x128xf32, #tpu.memory_space<vmem>>, vector<128x128xf32>,
      %53 = arith.truncf %47 : vector<128x128xf32> to vector<128x128xbf16>
      %54 = arith.index_cast %3 : i32 to index
      %c0_24 = arith.constant 0 : index
      %55 = vector.load %arg11[%54, %c0_24] : memref<384x128xbf16, #tpu.memory_space<vmem>>, vector<128x128xbf16>
      tpu.vector_store %arg11[%54, %c0_24], %53 {strides = array<i32>} : memref<384x128xbf16, #tpu.memory_space<vmem>>, vector<128x128xbf16>,
    } else {
    }
    return
  }
  func.func @transform_0(%arg0: i32, %arg1: i32, %arg2: i32) -> (i32, i32) {
    %c0_i32 = arith.constant 0 : i32
    return %arg1, %arg2 : i32, i32
  }
  func.func @transform_1(%arg0: i32, %arg1: i32, %arg2: i32) -> (i32, i32) {
    %c0_i32 = arith.constant 0 : i32
    %c0_i32_0 = arith.constant 0 : i32
    return %arg1, %c0_i32 : i32, i32
  }
  func.func @transform_2(%arg0: i32, %arg1: i32, %arg2: i32) -> (i32, i32) {
    %c0_i32 = arith.constant 0 : i32
    %c0_i32_0 = arith.constant 0 : i32
    return %arg2, %c0_i32 : i32, i32
  }
  func.func @transform_3(%arg0: i32, %arg1: i32, %arg2: i32) -> (i32, i32) {
    %c0_i32 = arith.constant 0 : i32
    %c0_i32_0 = arith.constant 0 : i32
    %c0_i32_1 = arith.constant 0 : i32
    return %c0_i32, %c0_i32_0 : i32, i32
  }
  func.func @transform_4(%arg0: i32, %arg1: i32, %arg2: i32) -> (i32, i32) {
    %c0_i32 = arith.constant 0 : i32
    %c0_i32_0 = arith.constant 0 : i32
    %c0_i32_1 = arith.constant 0 : i32
    return %c0_i32, %c0_i32_0 : i32, i32
  }
  func.func @transform_5(%arg0: i32, %arg1: i32, %arg2: i32) -> (i32, i32) {
    %c0_i32 = arith.constant 0 : i32
    %c0_i32_0 = arith.constant 0 : i32
    %c0_i32_1 = arith.constant 0 : i32
    return %c0_i32, %c0_i32_0 : i32, i32
  }
  func.func @transform_6(%arg0: i32, %arg1: i32, %arg2: i32) -> (i32, i32) {
    %c0_i32 = arith.constant 0 : i32
    %c0_i32_0 = arith.constant 0 : i32
    %c0_i32_1 = arith.constant 0 : i32
    return %c0_i32, %c0_i32_0 : i32, i32
  }
}

</mosaic_0001>

<bundles_post_ra>
// kernel: tpu_custom_call.1
= control target key start
LH: loop header
LB: loop body
LE: loop exit
PB: predicated region body
PF: predicated region fallthrough
CT: control target
= control target key end

     0   :  { %s2870_s0 = inlined_call_operand.hbm [shape: bf16[256,384], index: 0, kind: input, shape index: {}]   ;;  %s2871_s1 = inlined_call_operand.hbm [shape: bf16[256,128], index: 1, kind: input, shape index: {}]   ;;  %s2872_s2 = inlined_call_operand.hbm [shape: bf16[384,128], index: 2, kind: input, shape index: {}]   ;;  %s2873_s3 = inlined_call_operand.hbm [shape: f32[256,128], index: 3, kind: output, shape index: {0}]   ;;  %s2874_s4 = inlined_call_operand.hbm [shape: f32[384,128], index: 4, kind: output, shape index: {1}]   ;;  %s2875_s5 = inlined_call_operand.hbm [shape: f32[256,128], index: 5, kind: output, shape index: {2}]   ;;  %s2876_s6 = inlined_call_operand.hbm [shape: f32[384,128], index: 6, kind: output, shape index: {3}]  }
   0x1   :  { %2890 = sst [smem:[#allocation33_spill]] %s2871_s1 }
   0x2   :  { %2891 = sst [smem:[#allocation34_spill]] %s2873_s3 }
   0x3   :  { %2892 = sst [smem:[#allocation35_spill]] %s2874_s4 }
   0x4   :  { %2893 = sst [smem:[#allocation36_spill]] %s2875_s5 }
   0x5   :  { %2894 = sst [smem:[#allocation37_spill]] %s2876_s6 }
   0x6   :  { %12 = vsyncpa [#allocation5], 0 }
   0x7   :  { %14 = vsyncpa [#allocation5 + $0x1], 0 }
   0x8   :  { %15 = vsyncpa [#allocation8], 0 }
   0x9   :  { %17 = vsyncpa [#allocation8 + $0x1], 0 }
   0xa   :  { %18 = vsyncpa [#allocation6], 0 }
   0xb   :  { %19 = vsyncpa [#allocation12], 0 }
   0xc   :  { %20 = vsyncpa [#allocation15], 0  ;;  %s2214_s21 = smov 0   ;;  %s2216_s22 = smov 0  }
   0xd   :  { %s2218_s23 = smov 0   ;;  %s2220_s24 = smov 0  }
   0xe   :  { %s2222_s25 = smov 0   ;;  %s2224_s26 = smov 0  }
   0xf   :  { %s2226_s27 = smov 0   ;;  %s2228_s28 = smov 0  }
  0x10   :  { %s2230_s29 = smov 0   ;;  %s2232_s30 = smov 0  }
  0x11   :  { %s2234_s7 = smov 0   ;;  %s2236_s8 = smov 0  }
  0x12   :  { %s2238_s9 = smov 0   ;;  %s2240_s10 = smov 0  }
  0x13   :  { %s2242_s11 = smov 0   ;;  %s2244_s12 = smov 0  }
  0x14 LB: > { %2895 = sst [smem:[#allocation22_spill]] %s2124_s26  ;;  %s2293_s13 = sadd.s32 4294967295, %s2164_s12   ;;  %s2164_s12 = sphi %s2244_s12, %s26_s12   ;;  %s2160_s11 = sphi %s2242_s11, %s2948_s11   ;;  %s2156_s10 = sphi %s2240_s10, %s2937_s10   ;;  %s2152_s9 = sphi %s2238_s9, %s2947_s9   ;;  %s2148_s8 = sphi %s2236_s8, %s2935_s8   ;;  %s2144_s7 = sphi %s2234_s7, %s2934_s7   ;;  %s2140_s30 = sphi %s2232_s30, %s2946_s30   ;;  %s2136_s29 = sphi %s2230_s29, %s2933_s29   ;;  %s2132_s28 = sphi %s2228_s28, %s2945_s28   ;;  %s2128_s27 = sphi %s2226_s27, %s2944_s27   ;;  %s2124_s26 = sphi %s2224_s26, %s2931_s26   ;;  %s2120_s25 = sphi %s2222_s25, %s2943_s25   ;;  %s2116_s24 = sphi %s2220_s24, %s2942_s24   ;;  %s2112_s23 = sphi %s2218_s23, %s2941_s23   ;;  %s2108_s22 = sphi %s2216_s22, %s2940_s22   ;;  %s2104_s21 = sphi %s2214_s21, %s2939_s21  }
  0x15   : > { %2896 = sst [smem:[#allocation23_spill]] %s2136_s29  ;;  %p62_p0 = scmp.eq.s32.totalorder %s2164_s12, 0 }
  0x16   : > { %2897 = sst [smem:[#allocation24_spill]] %s2140_s30  ;;  %p68_p1 = scmp.eq.s32.totalorder %s2293_s13, 0 }
  0x17   : > { %2898 = sst [smem:[#allocation25_spill]] %s2148_s8  ;;  %p87_p2 = scmp.ne.s32.totalorder %s2124_s26, %s2120_s25 }
  0x18   : > { %2899 = sst [smem:[#allocation26_spill]] %s2156_s10  ;;  %p93_p3 = scmp.ne.s32.totalorder %s2120_s25, %s2116_s24 }
  0x19   : > { %2900 = sst [smem:[#allocation27_spill]] %s2160_s11  ;;  %p2304_p4 = por %p87_p2, %p62_p0 }
  0x1a   : > { %p1662_p5 = scmp.lt.s32.totalorder %s2164_s12, 12  ;;  %p2311_p6 = por %p93_p3, %p68_p1 }
  0x1b   : > { %s251_s18 = sand.u32 1, %s2164_s12   ;;  %s253_s19 = sand.u32 1, %s2124_s26  }
  0x1c   : > { %s1369_s20 = sshll.u32 %s253_s19, 6  ;;  %s1493_s15 = sshll.u32 %s2156_s10, 6 }
  0x1d   : > { %s2903_s1 = sld [smem:[#allocation33_spill]]  ;;  %s255_s3 = scalar_lea.vmem [#allocation7], %s1369_s20 }
  0x1e   : > { %s263_s4 = sshll.u32 %s255_s3, 4  ;;  %p1656_p7 = pnand %p1662_p5, %p2304_p4  ;;  %s264_s4 = int_to_ptr.vmem [resolvable:$true] %s263_s4 }
  0x1f   : > { %p1375_p8 = scmp.ge.s32.totalorder %s2164_s12, 1  ;;  %p293_p9 = scmp.lt.s32.totalorder %s2164_s12, 13 }
  0x20   : > { %s2327_s14 = scalar_lea.sflag [#allocation8], %s251_s18  ;;  %s38_s16 = sadd.s32 1, %s2152_s9 }
  0x21   : > { %p2333_p10 = pnand %p1375_p8, %p293_p9  ;;  %p39_p11 = scmp.ge.s32.totalorder %s38_s16, 3 }
  0x22   : > { %s45_s19 = sadd.s32 1, %s2160_s11  ;;  %s54_s18 = sadd.s32 1, %s2136_s29 }
  0x23   : > { %s260_s6 = scalar_lea.hbm %s2903_s1, %s1493_s15  ;;  %s2879_s15 = smov 4  }
  0x24   : > { %s261_s5 = sshll.u32 %s260_s6, 4  ;;  %s2877_s6 = smov 64   ;;  %s262_s5 = int_to_ptr.hbm [resolvable:$true] %s261_s5 }
  0x25   : > { %1658 = dma.hbm_to_vmem [thread:$0]  (!%p1656_p7), %s262_s5, 1024, %s264_s4, %s2327_s14, %s2877_s6, %s2877_s6, %s2879_s15  }
  0x26   : > { %p61_p12 = scmp.ne.s32.totalorder %s2136_s29, %s2132_s28  ;;  %s2950_s16 = smov (%p39_p11, %s38_s16), 0 }
  0x27   : > { %2905 = sst [smem:[#allocation28_spill]] %s2950_s16  ;;  %s2906_s20 = sadd.s32 1, %s2156_s10 }
  0x28   : > { %s2952_s20 = smov (!%p39_p11, %s2906_s20), %s2156_s10  ;;  %s2349_s24 = ssub.s32 %s2152_s9, %s2950_s16 }
  0x29   : > { %p2353_p13 = por %p62_p0, %p61_p12  ;;  %p43_p2 = scmp.ge.s32.totalorder %s2952_s20, 2 }
  0x2a   : > { %p67_p3 = scmp.ne.s32.totalorder %s2132_s28, %s2128_s27  ;;  %p104_p4 = scmp.eq.s32.totalorder %s2349_s24, 0 }
  0x2b   : > { %s227_s5 = sand.u32 1, %s2136_s29   ;;  %s2954_s20 = smov (%p43_p2, %s2952_s20), 0 }
  0x2c   : > { %2908 = sst [smem:[#allocation29_spill]] %s2954_s20  ;;  %s2956_s19 = smov (!%p43_p2, %s45_s19), %s2160_s11 }
  0x2d   : > { %s49_s6 = ssub.s32 %s2156_s10, %s2954_s20  ;;  %p2368_p7 = por %p68_p1, %p67_p3 }
  0x2e   : > { %p47_p8 = scmp.ge.s32.totalorder %s2956_s19, 2  ;;  %s51_s1 = sor.u32 %s2349_s24, %s49_s6 }
  0x2f   : > { %p52_p9 = scmp.eq.s32.totalorder %s51_s1, 0  ;;  %p78_p11 = scmp.eq.s32.totalorder %s49_s6, 0 }
  0x30   : > { %s2958_s19 = smov (%p47_p8, %s2956_s19), 0  ;;  %s2912_s16 = sadd.s32 1, %s2124_s26 }
  0x31   : > { %2910 = sst [smem:[#allocation30_spill]] %s2958_s19  ;;  %s1365_s20 = sshll.u32 %s227_s5, 6 }
  0x32   : > { %s2376_s27 = scalar_select %p52_p9, %s2136_s29, %s54_s18  }
  0x33   : > { %s2381_s8 = scalar_select %p78_p11, %s2124_s26, %s2912_s16  }
  0x34   : > { %2911 = sst [smem:[#allocation31_spill]] %s2376_s27  ;;  %s1629_s11 = smul.u32 48, %s2156_s10 }
  0x35   : > { %2913 = sst [smem:[#allocation32_spill]] %s2381_s8  ;;  %s231_s30 = scalar_lea.vmem [#allocation4], %s1365_s20 }
  0x36   : > { %s241_s1 = sshll.u32 %s231_s30, 4  ;;  %p1653_p12 = pnand %p1662_p5, %p2353_p13  ;;  %s242_s1 = int_to_ptr.vmem [resolvable:$true] %s241_s1 }
  0x37   : > { %s236_s6 = sadd.s32 %s2152_s9, %s1629_s11  ;;  %s228_s10 = scalar_lea.sflag [#allocation5], %s227_s5 }
  0x38   : > { %s1368_s16 = sshll.u32 %s236_s6, 2  ;;  %s2168_s20 = smov 192  }
  0x39   : > { %s238_s27 = scalar_lea.hbm %s2870_s0, %s1368_s16  ;;  %s2914_s8 = smov 4  }
  0x3a   : > { %s239_s29 = sshll.u32 %s238_s27, 4  ;;  %s2915_s26 = smov 64   ;;  %s240_s29 = int_to_ptr.hbm [resolvable:$true] %s239_s29 }
  0x3b   : > { %1655 = dma.hbm_to_vmem [thread:$0]  (!%p1653_p12), %s240_s29, 1024, %s242_s1, %s228_s10, %s2168_s20, %s2915_s26, %s2914_s8  }
  0x3c   : > { %s106_s30 = sadd.s32 1, %s2112_s23  ;;  %p113_p13 = scmp.ne.s32.totalorder %s2112_s23, %s2108_s22 }
  0x3d   : > { %s2400_s11 = scalar_select %p104_p4, %s2112_s23, %s106_s30  }
  0x3e   : > { %p115_p2 = por %p113_p13, %p62_p0  ;;  %p119_p3 = scmp.ne.s32.totalorder %s2108_s22, %s2104_s21 }
  0x3f   : > { %s275_s4 = sand.u32 1, %s2112_s23   ;;  %s1494_s19 = sshll.u32 %s2152_s9, 6 }
  0x40   : > { %p2410_p8 = por %p119_p3, %p68_p1  ;;  %s1372_s5 = sshll.u32 %s275_s4, 6 }
  0x41   : > { %s282_s10 = scalar_lea.hbm %s2872_s2, %s1494_s19  ;;  %s277_s16 = scalar_lea.vmem [#allocation9], %s1372_s5 }
  0x42   : > { %s283_s1 = sshll.u32 %s282_s10, 4  ;;  %s285_s24 = sshll.u32 %s277_s16, 4  ;;  %s284_s1 = int_to_ptr.hbm [resolvable:$true] %s283_s1  ;;  %s286_s24 = int_to_ptr.vmem [resolvable:$true] %s285_s24 }
  0x43   : > { %p1659_p0 = pnand %p1662_p5, %p115_p2  ;;  %297 = sbr.rel (%p2333_p10) target bundleno = 723 (0x2d3), region = 32 }
  0x44   : > { %s299_s21 = sand.u32 (!%p2333_p10), 1, %s2132_s28  }
  0x45   : > { %1661 = dma.hbm_to_vmem [thread:$0]  (!%p1659_p0), %s284_s1, 1024, %s286_s24, %s2327_s14, %s2915_s26, %s2915_s26, %s2914_s8  }
  0x46   : > { %s1376_s18 = sshll.u32 (!%p2333_p10), %s299_s21, 6  ;;  %s300_s20 = scalar_lea.sflag (!%p2333_p10), [#allocation5], %s299_s21 }
  0x47   : > { %s2426_s30 = scalar_lea.vmem (!%p2333_p10), [#allocation4], %s1376_s18 }
  0x48   : > { %2079 = dma.done.wait (%p2368_p7), %s300_s20, 1024  }
  0x49   : > { %2081 = vsyncadd (%p2368_p7), %s300_s20, 4294966272  ;;  %s309_s4 = sand.u32 1, %s2293_s13   ;;  %s311_s26 = sand.u32 1, %s2120_s25  }
  0x4a   : > { %s1377_s8 = sshll.u32 %s311_s26, 6  ;;  %s310_s14 = scalar_lea.sflag [#allocation8], %s309_s4 }
  0x4b   : > { %s2434_s3 = scalar_lea.vmem [#allocation7], %s1377_s8 }
  0x4c   : > { %2083 = dma.done.wait (%p2311_p6), %s310_s14, 1024  }
  0x4d   : > { %2085 = vsyncadd (%p2311_p6), %s310_s14, 4294966272  ;;  %s321_s19 = sand.u32 1, %s2108_s22  }
  0x4e   : > { %s1378_s5 = sshll.u32 %s321_s19, 6 }
  0x4f   : > { %s2441_s15 = scalar_lea.vmem [#allocation9], %s1378_s5 }
  0x50   : > { %2087 = dma.done.wait (%p2410_p8), %s310_s14, 1024  }
  0x51   : > { %2089 = vsyncadd (%p2410_p8), %s310_s14, 4294966272  ;;  %s2917_s6 = sld [smem:[#allocation24_spill]]  ;;  %s2448_s10 = sshll.u32 %s2144_s7, 7 }
  0x52   : > { %s2918_s29 = sld [smem:[#allocation25_spill]] }
  0x57   : > { %s2451_s17 = sshll.u32 %s2917_s6, 7  ;;  %p364_p5 = scmp.eq.s32.totalorder %s2917_s6, 0 }
  0x58   : > { %p363_p1 = scmp.eq.s32.totalorder %s2918_s29, 0 }
  0x5a   : > { %p365_p6 = pnand %p364_p5, %p363_p1 }
  0x5b   : > { %s385_s27 = sshra.s32 (!%p365_p6), %s2448_s10, 3  ;;  %s2461_s16 = scalar_lea.vmem (!%p365_p6), [#allocation10], %s2448_s10 }
  0x5c   : > { %368 = sbr.rel (%p365_p6) target bundleno = 122 (0x7a), region = 48  ;;  %s1381_s1 = sshll.u32 (!%p365_p6), %s385_s27, 2 }
  0x5d   : > { %s388_s24 = scalar_lea.vmem (!%p365_p6), [#allocation2], %s1381_s1 }
  0x61   : > { %v369_v0 = vld [vmem:[%s2434_s3] sm:$0xff]   ;;  %v371_v1 = vld [vmem:[%s2434_s3 + $0x8] sm:$0xff]   ;;  %v2169_v2 = vmov 0.0   ;;  %v373_v3 = vld [vmem:[%s2434_s3 + $0x10] sm:$0xff]  }
  0x62   : > { %406 = vst [vmem:[%s2461_s16] sm:$0xff] %v2169_v2  ;;  %v375_v4 = vld [vmem:[%s2434_s3 + $0x18] sm:$0xff]   ;;  %v377_v5 = vld [vmem:[%s2434_s3 + $0x20] sm:$0xff]   ;;  %v379_v6 = vld [vmem:[%s2434_s3 + $0x28] sm:$0xff]  }
  0x63   : > { %407 = vst [vmem:[%s2461_s16 + $0x8] sm:$0xff] %v2169_v2  ;;  %v381_v7 = vld [vmem:[%s2434_s3 + $0x30] sm:$0xff]   ;;  %v383_v8 = vld [vmem:[%s2434_s3 + $0x38] sm:$0xff]  }
  0x64   : > { %389 = vst [vmem:[%s388_s24] sm:$0xff] %v369_v0  }
  0x65   : > { %391 = vst [vmem:[%s388_s24 + $0x8] sm:$0xff] %v371_v1  }
  0x66   : > { %393 = vst [vmem:[%s388_s24 + $0x10] sm:$0xff] %v373_v3  }
  0x67   : > { %395 = vst [vmem:[%s388_s24 + $0x18] sm:$0xff] %v375_v4  }
  0x68   : > { %397 = vst [vmem:[%s388_s24 + $0x20] sm:$0xff] %v377_v5  }
  0x69   : > { %399 = vst [vmem:[%s388_s24 + $0x28] sm:$0xff] %v379_v6  }
  0x6a   : > { %401 = vst [vmem:[%s388_s24 + $0x30] sm:$0xff] %v381_v7  }
  0x6b   : > { %403 = vst [vmem:[%s388_s24 + $0x38] sm:$0xff] %v383_v8  }
  0x6c   : > { %408 = vst [vmem:[%s2461_s16 + $0x10] sm:$0xff] %v2169_v2 }
  0x6d   : > { %409 = vst [vmem:[%s2461_s16 + $0x18] sm:$0xff] %v2169_v2 }
  0x6e   : > { %410 = vst [vmem:[%s2461_s16 + $0x20] sm:$0xff] %v2169_v2 }
  0x6f   : > { %411 = vst [vmem:[%s2461_s16 + $0x28] sm:$0xff] %v2169_v2 }
  0x70   : > { %412 = vst [vmem:[%s2461_s16 + $0x30] sm:$0xff] %v2169_v2 }
  0x71   : > { %413 = vst [vmem:[%s2461_s16 + $0x38] sm:$0xff] %v2169_v2 }
  0x72   : > { %414 = vst [vmem:[%s2461_s16 + $0x40] sm:$0xff] %v2169_v2 }
  0x73   : > { %415 = vst [vmem:[%s2461_s16 + $0x48] sm:$0xff] %v2169_v2 }
  0x74   : > { %416 = vst [vmem:[%s2461_s16 + $0x50] sm:$0xff] %v2169_v2 }
  0x75   : > { %417 = vst [vmem:[%s2461_s16 + $0x58] sm:$0xff] %v2169_v2 }
  0x76   : > { %418 = vst [vmem:[%s2461_s16 + $0x60] sm:$0xff] %v2169_v2 }
  0x77   : > { %419 = vst [vmem:[%s2461_s16 + $0x68] sm:$0xff] %v2169_v2 }
  0x78   : > { %420 = vst [vmem:[%s2461_s16 + $0x70] sm:$0xff] %v2169_v2 }
  0x79   : > { %421 = vst [vmem:[%s2461_s16 + $0x78] sm:$0xff] %v2169_v2 }
  0x7a PF: > { %p422_p10 = scmp.eq.s32.totalorder %s2144_s7, 0 }
  0x7c   : > { %p423_p4 = pnand %p422_p10, %p363_p1 }
  0x7d   : > { %s443_s18 = sshra.s32 (!%p423_p4), %s2451_s17, 3  ;;  %s2492_s4 = scalar_lea.vmem (!%p423_p4), [#allocation11], %s2451_s17 }
  0x7e   : > { %426 = sbr.rel (%p423_p4) target bundleno = 156 (0x9c), region = 52  ;;  %s1382_s20 = sshll.u32 (!%p423_p4), %s443_s18, 2 }
  0x7f   : > { %s446_s26 = scalar_lea.vmem (!%p423_p4), [#allocation3], %s1382_s20 }
  0x83   : > { %v427_v9 = vld [vmem:[%s2441_s15] sm:$0xff]   ;;  %v429_v10 = vld [vmem:[%s2441_s15 + $0x8] sm:$0xff]   ;;  %v2170_v11 = vmov 0.0   ;;  %v431_v12 = vld [vmem:[%s2441_s15 + $0x10] sm:$0xff]  }
  0x84   : > { %464 = vst [vmem:[%s2492_s4] sm:$0xff] %v2170_v11  ;;  %v433_v13 = vld [vmem:[%s2441_s15 + $0x18] sm:$0xff]   ;;  %v435_v14 = vld [vmem:[%s2441_s15 + $0x20] sm:$0xff]   ;;  %v437_v15 = vld [vmem:[%s2441_s15 + $0x28] sm:$0xff]  }
  0x85   : > { %465 = vst [vmem:[%s2492_s4 + $0x8] sm:$0xff] %v2170_v11  ;;  %v439_v16 = vld [vmem:[%s2441_s15 + $0x30] sm:$0xff]   ;;  %v441_v17 = vld [vmem:[%s2441_s15 + $0x38] sm:$0xff]  }
  0x86   : > { %447 = vst [vmem:[%s446_s26] sm:$0xff] %v427_v9  }
  0x87   : > { %449 = vst [vmem:[%s446_s26 + $0x8] sm:$0xff] %v429_v10  }
  0x88   : > { %451 = vst [vmem:[%s446_s26 + $0x10] sm:$0xff] %v431_v12  }
  0x89   : > { %453 = vst [vmem:[%s446_s26 + $0x18] sm:$0xff] %v433_v13  }
  0x8a   : > { %455 = vst [vmem:[%s446_s26 + $0x20] sm:$0xff] %v435_v14  }
  0x8b   : > { %457 = vst [vmem:[%s446_s26 + $0x28] sm:$0xff] %v437_v15  }
  0x8c   : > { %459 = vst [vmem:[%s446_s26 + $0x30] sm:$0xff] %v439_v16  }
  0x8d   : > { %461 = vst [vmem:[%s446_s26 + $0x38] sm:$0xff] %v441_v17  }
  0x8e   : > { %466 = vst [vmem:[%s2492_s4 + $0x10] sm:$0xff] %v2170_v11 }
  0x8f   : > { %467 = vst [vmem:[%s2492_s4 + $0x18] sm:$0xff] %v2170_v11 }
  0x90   : > { %468 = vst [vmem:[%s2492_s4 + $0x20] sm:$0xff] %v2170_v11 }
  0x91   : > { %469 = vst [vmem:[%s2492_s4 + $0x28] sm:$0xff] %v2170_v11 }
  0x92   : > { %470 = vst [vmem:[%s2492_s4 + $0x30] sm:$0xff] %v2170_v11 }
  0x93   : > { %471 = vst [vmem:[%s2492_s4 + $0x38] sm:$0xff] %v2170_v11 }
  0x94   : > { %472 = vst [vmem:[%s2492_s4 + $0x40] sm:$0xff] %v2170_v11 }
  0x95   : > { %473 = vst [vmem:[%s2492_s4 + $0x48] sm:$0xff] %v2170_v11 }
  0x96   : > { %474 = vst [vmem:[%s2492_s4 + $0x50] sm:$0xff] %v2170_v11 }
  0x97   : > { %475 = vst [vmem:[%s2492_s4 + $0x58] sm:$0xff] %v2170_v11 }
  0x98   : > { %476 = vst [vmem:[%s2492_s4 + $0x60] sm:$0xff] %v2170_v11 }
  0x99   : > { %477 = vst [vmem:[%s2492_s4 + $0x68] sm:$0xff] %v2170_v11 }
  0x9a   : > { %478 = vst [vmem:[%s2492_s4 + $0x70] sm:$0xff] %v2170_v11 }
  0x9b   : > { %479 = vst [vmem:[%s2492_s4 + $0x78] sm:$0xff] %v2170_v11 }
  0x9c PF: > { %s2920_s8 = sld [smem:[#allocation24_spill]] }
  0xa2   : > { %p1383_p7 = scmp.ne.s32.totalorder %s2920_s8, 0 }
  0xa3   : > { %s483_s14 = scalar_lea.vmem (!%p1383_p7), [#allocation13], %s2448_s10 }
  0xa4   : > { %482 = sbr.rel (%p1383_p7) target bundleno = 186 (0xba), region = 56 }
  0xa9   : > { %v2171_v18 = vmov 0.0  }
  0xaa   : > { %484 = vst [vmem:[%s483_s14] sm:$0xff] %v2171_v18 }
  0xab   : > { %485 = vst [vmem:[%s483_s14 + $0x8] sm:$0xff] %v2171_v18 }
  0xac   : > { %486 = vst [vmem:[%s483_s14 + $0x10] sm:$0xff] %v2171_v18 }
  0xad   : > { %487 = vst [vmem:[%s483_s14 + $0x18] sm:$0xff] %v2171_v18 }
  0xae   : > { %488 = vst [vmem:[%s483_s14 + $0x20] sm:$0xff] %v2171_v18 }
  0xaf   : > { %489 = vst [vmem:[%s483_s14 + $0x28] sm:$0xff] %v2171_v18 }
  0xb0   : > { %490 = vst [vmem:[%s483_s14 + $0x30] sm:$0xff] %v2171_v18 }
  0xb1   : > { %491 = vst [vmem:[%s483_s14 + $0x38] sm:$0xff] %v2171_v18 }
  0xb2   : > { %492 = vst [vmem:[%s483_s14 + $0x40] sm:$0xff] %v2171_v18 }
  0xb3   : > { %493 = vst [vmem:[%s483_s14 + $0x48] sm:$0xff] %v2171_v18 }
  0xb4   : > { %494 = vst [vmem:[%s483_s14 + $0x50] sm:$0xff] %v2171_v18 }
  0xb5   : > { %495 = vst [vmem:[%s483_s14 + $0x58] sm:$0xff] %v2171_v18 }
  0xb6   : > { %496 = vst [vmem:[%s483_s14 + $0x60] sm:$0xff] %v2171_v18 }
  0xb7   : > { %497 = vst [vmem:[%s483_s14 + $0x68] sm:$0xff] %v2171_v18 }
  0xb8   : > { %498 = vst [vmem:[%s483_s14 + $0x70] sm:$0xff] %v2171_v18 }
  0xb9   : > { %499 = vst [vmem:[%s483_s14 + $0x78] sm:$0xff] %v2171_v18 }
  0xba PF: > { %p1384_p9 = scmp.ne.s32.totalorder %s2144_s7, 0 }
  0xbb   : > { %s503_s3 = scalar_lea.vmem (!%p1384_p9), [#allocation14], %s2451_s17 }
  0xbc   : > { %502 = sbr.rel (%p1384_p9) target bundleno = 210 (0xd2), region = 60 }
  0xc1   : > { %v2172_v19 = vmov 0.0  }
  0xc2   : > { %504 = vst [vmem:[%s503_s3] sm:$0xff] %v2172_v19 }
  0xc3   : > { %505 = vst [vmem:[%s503_s3 + $0x8] sm:$0xff] %v2172_v19 }
  0xc4   : > { %506 = vst [vmem:[%s503_s3 + $0x10] sm:$0xff] %v2172_v19 }
  0xc5   : > { %507 = vst [vmem:[%s503_s3 + $0x18] sm:$0xff] %v2172_v19 }
  0xc6   : > { %508 = vst [vmem:[%s503_s3 + $0x20] sm:$0xff] %v2172_v19 }
  0xc7   : > { %509 = vst [vmem:[%s503_s3 + $0x28] sm:$0xff] %v2172_v19 }
  0xc8   : > { %510 = vst [vmem:[%s503_s3 + $0x30] sm:$0xff] %v2172_v19 }
  0xc9   : > { %511 = vst [vmem:[%s503_s3 + $0x38] sm:$0xff] %v2172_v19 }
  0xca   : > { %512 = vst [vmem:[%s503_s3 + $0x40] sm:$0xff] %v2172_v19 }
  0xcb   : > { %513 = vst [vmem:[%s503_s3 + $0x48] sm:$0xff] %v2172_v19 }
  0xcc   : > { %514 = vst [vmem:[%s503_s3 + $0x50] sm:$0xff] %v2172_v19 }
  0xcd   : > { %515 = vst [vmem:[%s503_s3 + $0x58] sm:$0xff] %v2172_v19 }
  0xce   : > { %516 = vst [vmem:[%s503_s3 + $0x60] sm:$0xff] %v2172_v19 }
  0xcf   : > { %517 = vst [vmem:[%s503_s3 + $0x68] sm:$0xff] %v2172_v19 }
  0xd0   : > { %518 = vst [vmem:[%s503_s3 + $0x70] sm:$0xff] %v2172_v19 }
  0xd1   : > { %519 = vst [vmem:[%s503_s3 + $0x78] sm:$0xff] %v2172_v19 }
  0xd2 PF: > { %v2521_v20 = vld [vmem:[%s2426_s30] sm:$0xff]  ;;  %v2525_v21 = vld [vmem:[%s2426_s30 + $0x8] sm:$0xff]  ;;  %v2529_v22 = vld [vmem:[%s2426_s30 + $0x10] sm:$0xff]  ;;  %s556_s19 = sshra.s32 %s2448_s10, 3  ;;  %s536_s6 = sshra.s32 %s2451_s17, 3 }
  0xd3   : > { %787 = vxpose.xlu0.c.b16.start [1/8] %v2521_v20, 128  ;;  %v2533_v23 = vld [vmem:[%s2426_s30 + $0x18] sm:$0xff]  ;;  %v2537_v24 = vld [vmem:[%s2426_s30 + $0x20] sm:$0xff]  ;;  %s1386_s5 = sshll.u32 %s556_s19, 2  ;;  %v2542_v25 = vld [vmem:[%s2426_s30 + $0x28] sm:$0xff]  ;;  %s1385_s29 = sshll.u32 %s536_s6, 2 }
  0xd4   : > { %s2545_s15 = scalar_lea.vmem [#allocation2], %s1386_s5  ;;  %v1501_v30 = vld [vmem:[%s2426_s30 + $0x30] sm:$0xff]  ;;  %v1502_v35 = vld [vmem:[%s2426_s30 + $0x38] sm:$0xff]  ;;  %s2558_s27 = scalar_lea.vmem [#allocation3], %s1385_s29 }
  0xd5   : > { %v1518_v26 = vld [vmem:[%s2545_s15 + $0x38] sm:$0xff]  ;;  %v1517_v27 = vld [vmem:[%s2545_s15 + $0x30] sm:$0xff]  ;;  %v1516_v28 = vld [vmem:[%s2545_s15 + $0x28] sm:$0xff]  ;;  %s2921_s30 = sld [smem:[#allocation25_spill]]  ;;  %s2575_s16 = scalar_lea.vmem [#allocation14], %s2451_s17 }
  0xd6   : > { %851 = vmatpush.bf16.msra.mxu1 %v1518_v26  ;;  %1621 = vmatpush.bf16.msra.mxu3 %v1518_v26  ;;  %v1515_v29 = vld [vmem:[%s2545_s15 + $0x20] sm:$0xff]  ;;  %v1514_v31 = vld [vmem:[%s2545_s15 + $0x18] sm:$0xff]  ;;  %v1513_v32 = vld [vmem:[%s2545_s15 + $0x10] sm:$0xff]  ;;  %s2922_s1 = sld [smem:[#allocation24_spill]]  ;;  %s2594_s21 = scalar_lea.vmem [#allocation13], %s2448_s10 }
  0xd7   : > { %v1512_v33 = vld [vmem:[%s2545_s15 + $0x8] sm:$0xff]  ;;  %v1511_v34 = vld [vmem:[%s2545_s15] sm:$0xff]  ;;  %v1510_v36 = vld [vmem:[%s2558_s27 + $0x38] sm:$0xff] }
  0xd8   : > { %1613 = vmatpush.bf16.msra.mxu2 %v1510_v36  ;;  %v1509_v37 = vld [vmem:[%s2558_s27 + $0x30] sm:$0xff]  ;;  %689 = vmatpush.bf16.msra.mxu0 %v1510_v36  ;;  %v1508_v39 = vld [vmem:[%s2558_s27 + $0x28] sm:$0xff]  ;;  %v1507_v40 = vld [vmem:[%s2558_s27 + $0x20] sm:$0xff] }
  0xd9   : > { %v1506_v41 = vld [vmem:[%s2558_s27 + $0x18] sm:$0xff]  ;;  %v1505_v42 = vld [vmem:[%s2558_s27 + $0x10] sm:$0xff]  ;;  %v1504_v44 = vld [vmem:[%s2558_s27 + $0x8] sm:$0xff] }
  0xda   : > { %852 = vmatpush.bf16.msra.mxu1 %v1517_v27  ;;  %1622 = vmatpush.bf16.msra.mxu3 %v1517_v27  ;;  %v1503_v45 = vld [vmem:[%s2558_s27] sm:$0xff]  ;;  %v772_v55 = vld [vmem:[%s2575_s16 + $0x8] sm:$0xff]  ;;  %v773_v58 = vld [vmem:[%s2575_s16 + $0x10] sm:$0xff] }
  0xdb   : > { %v771_v52 = vld [vmem:[%s2575_s16] sm:$0xff]  ;;  %p932_p11 = scmp.lt.s32.totalorder %s2921_s30, 1  ;;  %v774_v61 = vld [vmem:[%s2575_s16 + $0x18] sm:$0xff]  ;;  %v578_v9 = vld [vmem:[%s2594_s21 + $0x8] sm:$0xff] }
  0xdc   : > { %1614 = vmatpush.bf16.msra.mxu2 %v1509_v37  ;;  %690 = vmatpush.bf16.msra.mxu0 %v1509_v37  ;;  %p933_p12 = scmp.eq.s32.totalorder %s2922_s1, 2  ;;  %v577_v0 = vld [vmem:[%s2594_s21] sm:$0xff]  ;;  %v586_v12 = vld [vmem:[%s2594_s21 + $0x48] sm:$0xff]  ;;  %v579_v18 = vld [vmem:[%s2594_s21 + $0x10] sm:$0xff] }
  0xdd   : > { %v585_v3 = vld [vmem:[%s2594_s21 + $0x40] sm:$0xff]  ;;  %v776_v13 = vld [vmem:[%s2575_s16 + $0x28] sm:$0xff]  ;;  %v580_v27 = vld [vmem:[%s2594_s21 + $0x18] sm:$0xff] }
  0xde   : > { %853 = vmatpush.bf16.msra.mxu1 %v1516_v28  ;;  %1623 = vmatpush.bf16.msra.mxu3 %v1516_v28  ;;  %p2582_p13 = pnand %p933_p12, %p932_p11  ;;  %v775_v4 = vld [vmem:[%s2575_s16 + $0x20] sm:$0xff] }
  0xdf   : > { %v581_v36 = vld [vmem:[%s2594_s21 + $0x20] sm:$0xff]  ;;  %s2660_s18 = scalar_lea.vmem (!%p2582_p13), [#allocation10], %s2448_s10 }
  0xe0   : > { %1615 = vmatpush.bf16.msra.mxu2 %v1508_v39  ;;  %691 = vmatpush.bf16.msra.mxu0 %v1508_v39  ;;  %v589_v39 = vld [vmem:[%s2594_s21 + $0x60] sm:$0xff] }
  0xe2   : > { %854 = vmatpush.bf16.msra.mxu1 %v1515_v29  ;;  %1624 = vmatpush.bf16.msra.mxu3 %v1515_v29 }
  0xe3   : > { %788 = vxpose.xlu0.c.b16.cont [2/8] %v2525_v21, 128 }
  0xe4   : > { %1616 = vmatpush.bf16.msra.mxu2 %v1507_v40  ;;  %692 = vmatpush.bf16.msra.mxu0 %v1507_v40 }
  0xe6   : > { %855 = vmatpush.bf16.msra.mxu1 %v1514_v31  ;;  %1625 = vmatpush.bf16.msra.mxu3 %v1514_v31  ;;  %v778_v31 = vld [vmem:[%s2575_s16 + $0x38] sm:$0xff] }
  0xe8   : > { %1617 = vmatpush.bf16.msra.mxu2 %v1506_v41  ;;  %693 = vmatpush.bf16.msra.mxu0 %v1506_v41 }
  0xea   : > { %856 = vmatpush.bf16.msra.mxu1 %v1513_v32  ;;  %1626 = vmatpush.bf16.msra.mxu3 %v1513_v32 }
  0xec   : > { %1618 = vmatpush.bf16.msra.mxu2 %v1505_v42  ;;  %694 = vmatpush.bf16.msra.mxu0 %v1505_v42  ;;  %v582_v42 = vld [vmem:[%s2594_s21 + $0x28] sm:$0xff] }
  0xee   : > { %857 = vmatpush.bf16.msra.mxu1 %v1512_v33  ;;  %1627 = vmatpush.bf16.msra.mxu3 %v1512_v33 }
  0xf0   : > { %1619 = vmatpush.bf16.msra.mxu2 %v1504_v44  ;;  %695 = vmatpush.bf16.msra.mxu0 %v1504_v44  ;;  %v779_v44 = vld [vmem:[%s2575_s16 + $0x40] sm:$0xff] }
  0xf2   : > { %858 = vmatpush.bf16.msra.mxu1 %v1511_v34  ;;  %1628 = vmatpush.bf16.msra.mxu3 %v1511_v34 }
  0xf3   : > { %789 = vxpose.xlu0.c.b16.cont [3/8] %v2529_v22, 128 }
  0xf4   : > { %1620 = vmatpush.bf16.msra.mxu2 %v1503_v45  ;;  %696 = vmatpush.bf16.msra.mxu0 %v1503_v45 }
  0xf7   : > { %717 = vmatmul.bf16.vlgmr.msra.gmra.mxu2 %v2537_v24  ;;  %697 = vmatmul.bf16.vlgmr.msra.gmra.mxu0 %v2521_v20 }
 0x103   : > { %790 = vxpose.xlu0.c.b16.cont [4/8] %v2533_v23, 128 }
 0x107   : > { %722 = vmatmul.bf16.gmra.mxu2 %v2542_v25  ;;  %702 = vmatmul.bf16.gmra.mxu0 %v2525_v21  ;;  %v587_v21 = vld [vmem:[%s2594_s21 + $0x50] sm:$0xff] }
 0x113   : > { %791 = vxpose.xlu0.c.b16.cont [5/8] %v2537_v24, 128 }
 0x117   : > { %727 = vmatmul.bf16.gmra.mxu2 %v1501_v30  ;;  %707 = vmatmul.bf16.gmra.mxu0 %v2529_v22  ;;  %v777_v22 = vld [vmem:[%s2575_s16 + $0x30] sm:$0xff] }
 0x123   : > { %792 = vxpose.xlu0.c.b16.cont [6/8] %v2542_v25, 128 }
 0x127   : > { %732 = vmatmul.bf16.gmra.mxu2 %v1502_v35  ;;  %712 = vmatmul.bf16.gmra.mxu0 %v2533_v23 }
 0x133   : > { %793 = vxpose.xlu0.c.b16.cont [7/8] %v1501_v30, 128  ;;  %v588_v30 = vld [vmem:[%s2594_s21 + $0x58] sm:$0xff] }
 0x143   : > { %794 = vxpose.xlu0.c.b16.end [8/8] %v1502_v35, 128 }
 0x174   : > { %v698_v1 = vpop.f32.mrf.mxu0 }
 0x175   : > { %v738_v2 = vadd.f32 %v698_v1, %v577_v0  ;;  %v592_v0 = vld [vmem:[%s2594_s21 + $0x78] sm:$0xff] }
 0x177   : > { %754 = vst [vmem:[%s2594_s21] sm:$0xff] %v738_v2 }
 0x17a   : > { %v718_v5 = vpop.f32.mrf.mxu2 }
 0x17b   : > { %v746_v6 = vadd.f32 %v718_v5, %v585_v3  ;;  %v782_v5 = vld [vmem:[%s2575_s16 + $0x58] sm:$0xff] }
 0x17c   : > { %v700_v10 = vpop.f32.mrf.mxu0 }
 0x17d   : > { %762 = vst [vmem:[%s2594_s21 + $0x40] sm:$0xff] %v746_v6  ;;  %v739_v11 = vadd.f32 %v700_v10, %v578_v9 }
 0x17f   : > { %v795_v38 = vpop.trf.xlu0  ;;  %755 = vst [vmem:[%s2594_s21 + $0x8] sm:$0xff] %v739_v11  ;;  %v784_v11 = vld [vmem:[%s2575_s16 + $0x68] sm:$0xff] }
 0x180   : > { %859 = vmatmul.bf16.vlgmr.msra.gmra.mxu1 %v795_v38 }
 0x182   : > { %v720_v14 = vpop.f32.mrf.mxu2 }
 0x183   : > { %v747_v15 = vadd.f32 %v720_v14, %v586_v12  ;;  %v785_v14 = vld [vmem:[%s2575_s16 + $0x70] sm:$0xff] }
 0x184   : > { %v703_v19 = vpop.f32.mrf.mxu0 }
 0x185   : > { %763 = vst [vmem:[%s2594_s21 + $0x48] sm:$0xff] %v747_v15  ;;  %v740_v20 = vadd.f32 %v703_v19, %v579_v18 }
 0x187   : > { %756 = vst [vmem:[%s2594_s21 + $0x10] sm:$0xff] %v740_v20 }
 0x18a   : > { %v723_v23 = vpop.f32.mrf.mxu2 }
 0x18b   : > { %v748_v24 = vadd.f32 %v723_v23, %v587_v21 }
 0x18c   : > { %v705_v28 = vpop.f32.mrf.mxu0 }
 0x18d   : > { %764 = vst [vmem:[%s2594_s21 + $0x50] sm:$0xff] %v748_v24  ;;  %v741_v29 = vadd.f32 %v705_v28, %v580_v27 }
 0x18f   : > { %v796_v43 = vpop.trf.xlu0  ;;  %757 = vst [vmem:[%s2594_s21 + $0x18] sm:$0xff] %v741_v29 }
 0x190   : > { %864 = vmatmul.bf16.gmra.mxu1 %v796_v43 }
 0x192   : > { %v725_v32 = vpop.f32.mrf.mxu2 }
 0x193   : > { %v749_v33 = vadd.f32 %v725_v32, %v588_v30 }
 0x194   : > { %v708_v37 = vpop.f32.mrf.mxu0 }
 0x195   : > { %765 = vst [vmem:[%s2594_s21 + $0x58] sm:$0xff] %v749_v33  ;;  %v742_v38 = vadd.f32 %v708_v37, %v581_v36 }
 0x197   : > { %758 = vst [vmem:[%s2594_s21 + $0x20] sm:$0xff] %v742_v38 }
 0x19a   : > { %v728_v40 = vpop.f32.mrf.mxu2 }
 0x19b   : > { %v750_v41 = vadd.f32 %v728_v40, %v589_v39 }
 0x19c   : > { %v710_v43 = vpop.f32.mrf.mxu0 }
 0x19d   : > { %766 = vst [vmem:[%s2594_s21 + $0x60] sm:$0xff] %v750_v41  ;;  %v743_v45 = vadd.f32 %v710_v43, %v582_v42 }
 0x19f   : > { %v797_v46 = vpop.trf.xlu0  ;;  %759 = vst [vmem:[%s2594_s21 + $0x28] sm:$0xff] %v743_v45 }
 0x1a0   : > { %869 = vmatmul.bf16.gmra.mxu1 %v797_v46  ;;  %v590_v46 = vld [vmem:[%s2594_s21 + $0x68] sm:$0xff] }
 0x1af   : > { %v798_v47 = vpop.trf.xlu0 }
 0x1b0   : > { %874 = vmatmul.bf16.gmra.mxu1 %v798_v47 }
 0x1bf   : > { %v799_v48 = vpop.trf.xlu0 }
 0x1c0   : > { %879 = vmatmul.bf16.vlgmr.msra.gmra.mxu3 %v799_v48  ;;  %v730_v48 = vpop.f32.mrf.mxu2 }
 0x1cf   : > { %v800_v49 = vpop.trf.xlu0 }
 0x1d0   : > { %884 = vmatmul.bf16.gmra.mxu3 %v800_v49 }
 0x1df   : > { %v801_v50 = vpop.trf.xlu0 }
 0x1e0   : > { %889 = vmatmul.bf16.gmra.mxu3 %v801_v50  ;;  %v751_v50 = vadd.f32 %v730_v48, %v590_v46 }
 0x1e2   : > { %767 = vst [vmem:[%s2594_s21 + $0x68] sm:$0xff] %v751_v50 }
 0x1ef   : > { %v802_v51 = vpop.trf.xlu0 }
 0x1f0   : > { %894 = vmatmul.bf16.gmra.mxu3 %v802_v51  ;;  %v583_v51 = vld [vmem:[%s2594_s21 + $0x30] sm:$0xff] }
 0x1fd   : > { %v860_v53 = vpop.f32.mrf.mxu1 }
 0x1fe   : > { %v900_v54 = vadd.f32 %v860_v53, %v771_v52  ;;  %v713_v52 = vpop.f32.mrf.mxu0  ;;  %v780_v53 = vld [vmem:[%s2575_s16 + $0x48] sm:$0xff] }
 0x200   : > { %916 = vst [vmem:[%s2575_s16] sm:$0xff] %v900_v54  ;;  %v744_v54 = vadd.f32 %v713_v52, %v583_v51 }
 0x202   : > { %760 = vst [vmem:[%s2594_s21 + $0x30] sm:$0xff] %v744_v54 }
 0x205   : > { %v862_v56 = vpop.f32.mrf.mxu1 }
 0x206   : > { %v901_v57 = vadd.f32 %v862_v56, %v772_v55  ;;  %v591_v55 = vld [vmem:[%s2594_s21 + $0x70] sm:$0xff] }
 0x208   : > { %917 = vst [vmem:[%s2575_s16 + $0x8] sm:$0xff] %v901_v57  ;;  %v733_v57 = vpop.f32.mrf.mxu2 }
 0x20d   : > { %v865_v59 = vpop.f32.mrf.mxu1 }
 0x20e   : > { %v902_v60 = vadd.f32 %v865_v59, %v773_v58  ;;  %v752_v59 = vadd.f32 %v733_v57, %v591_v55 }
 0x210   : > { %918 = vst [vmem:[%s2575_s16 + $0x10] sm:$0xff] %v902_v60  ;;  %v584_v60 = vld [vmem:[%s2594_s21 + $0x38] sm:$0xff]  ;;  %v735_v2 = vpop.f32.mrf.mxu2 }
 0x211   : > { %768 = vst [vmem:[%s2594_s21 + $0x70] sm:$0xff] %v752_v59 }
 0x215   : > { %v867_v62 = vpop.f32.mrf.mxu1 }
 0x216   : > { %v903_v63 = vadd.f32 %v867_v62, %v774_v61  ;;  %v715_v61 = vpop.f32.mrf.mxu0  ;;  %v781_v62 = vld [vmem:[%s2575_s16 + $0x50] sm:$0xff] }
 0x218   : > { %919 = vst [vmem:[%s2575_s16 + $0x18] sm:$0xff] %v903_v63  ;;  %v745_v63 = vadd.f32 %v715_v61, %v584_v60 }
 0x21a   : > { %761 = vst [vmem:[%s2594_s21 + $0x38] sm:$0xff] %v745_v63 }
 0x21d   : > { %v870_v7 = vpop.f32.mrf.mxu1 }
 0x21e   : > { %v904_v8 = vadd.f32 %v870_v7, %v775_v4  ;;  %v753_v4 = vadd.f32 %v735_v2, %v592_v0 }
 0x220   : > { %920 = vst [vmem:[%s2575_s16 + $0x20] sm:$0xff] %v904_v8  ;;  %v783_v8 = vld [vmem:[%s2575_s16 + $0x60] sm:$0xff] }
 0x221   : > { %769 = vst [vmem:[%s2594_s21 + $0x78] sm:$0xff] %v753_v4 }
 0x225   : > { %v872_v16 = vpop.f32.mrf.mxu1 }
 0x226   : > { %v905_v17 = vadd.f32 %v872_v16, %v776_v13 }
 0x228   : > { %921 = vst [vmem:[%s2575_s16 + $0x28] sm:$0xff] %v905_v17  ;;  %v786_v17 = vld [vmem:[%s2575_s16 + $0x78] sm:$0xff] }
 0x22d   : > { %v875_v25 = vpop.f32.mrf.mxu1 }
 0x22e   : > { %v906_v26 = vadd.f32 %v875_v25, %v777_v22 }
 0x230   : > { %922 = vst [vmem:[%s2575_s16 + $0x30] sm:$0xff] %v906_v26 }
 0x235   : > { %v877_v34 = vpop.f32.mrf.mxu1 }
 0x236   : > { %v907_v35 = vadd.f32 %v877_v34, %v778_v31 }
 0x238   : > { %923 = vst [vmem:[%s2575_s16 + $0x38] sm:$0xff] %v907_v35 }
 0x243   : > { %v880_v47 = vpop.f32.mrf.mxu3 }
 0x244   : > { %v908_v49 = vadd.f32 %v880_v47, %v779_v44 }
 0x246   : > { %924 = vst [vmem:[%s2575_s16 + $0x40] sm:$0xff] %v908_v49 }
 0x24b   : > { %v882_v56 = vpop.f32.mrf.mxu3 }
 0x24c   : > { %v909_v58 = vadd.f32 %v882_v56, %v780_v53 }
 0x24e   : > { %925 = vst [vmem:[%s2575_s16 + $0x48] sm:$0xff] %v909_v58 }
 0x253   : > { %v885_v1 = vpop.f32.mrf.mxu3 }
 0x254   : > { %v910_v3 = vadd.f32 %v885_v1, %v781_v62 }
 0x256   : > { %926 = vst [vmem:[%s2575_s16 + $0x50] sm:$0xff] %v910_v3 }
 0x25b   : > { %v887_v6 = vpop.f32.mrf.mxu3 }
 0x25c   : > { %v911_v7 = vadd.f32 %v887_v6, %v782_v5 }
 0x25e   : > { %927 = vst [vmem:[%s2575_s16 + $0x58] sm:$0xff] %v911_v7 }
 0x263   : > { %v890_v9 = vpop.f32.mrf.mxu3 }
 0x264   : > { %v912_v10 = vadd.f32 %v890_v9, %v783_v8 }
 0x266   : > { %928 = vst [vmem:[%s2575_s16 + $0x60] sm:$0xff] %v912_v10 }
 0x26b   : > { %v892_v12 = vpop.f32.mrf.mxu3 }
 0x26c   : > { %v913_v13 = vadd.f32 %v892_v12, %v784_v11 }
 0x26e   : > { %929 = vst [vmem:[%s2575_s16 + $0x68] sm:$0xff] %v913_v13 }
 0x273   : > { %v895_v15 = vpop.f32.mrf.mxu3 }
 0x274   : > { %v914_v16 = vadd.f32 %v895_v15, %v785_v14 }
 0x276   : > { %930 = vst [vmem:[%s2575_s16 + $0x70] sm:$0xff] %v914_v16 }
 0x27a   : > { %937 = sbr.rel (%p2582_p13) target bundleno = 666 (0x29a), region = 64 }
 0x27b   : > { %v897_v18 = vpop.f32.mrf.mxu3 }
 0x27c   : > { %v915_v19 = vadd.f32 %v897_v18, %v786_v17 }
 0x27e   : > { %931 = vst [vmem:[%s2575_s16 + $0x78] sm:$0xff] %v915_v19 }
 0x27f   : > { %v938_v20 = vld [vmem:[%s2594_s21] sm:$0xff]  ;;  %v939_v21 = vld [vmem:[%s2594_s21 + $0x8] sm:$0xff]  ;;  %v2657_v22 = vld [vmem:[%s2594_s21 + $0x10] sm:$0xff] }
 0x280   : > { %v955_v23 = vld [vmem:[%s2660_s18] sm:$0xff]  ;;  %v956_v24 = vld [vmem:[%s2660_s18 + $0x8] sm:$0xff]  ;;  %v957_v25 = vld [vmem:[%s2660_s18 + $0x10] sm:$0xff]  ;;  %v1522_v26 = vpack.c.bf16 %v939_v21, %v938_v20 }
 0x281   : > { %v971_v27 = vadd.f32 %v955_v23, %v938_v20  ;;  %v972_v28 = vadd.f32 %v956_v24, %v939_v21  ;;  %v973_v29 = vadd.f32 %v957_v25, %v2657_v22  ;;  %v941_v30 = vld [vmem:[%s2594_s21 + $0x18] sm:$0xff]  ;;  %v942_v32 = vld [vmem:[%s2594_s21 + $0x20] sm:$0xff]  ;;  %v943_v35 = vld [vmem:[%s2594_s21 + $0x28] sm:$0xff] }
 0x282   : > { %v958_v31 = vld [vmem:[%s2660_s18 + $0x18] sm:$0xff]  ;;  %v959_v34 = vld [vmem:[%s2660_s18 + $0x20] sm:$0xff]  ;;  %v960_v36 = vld [vmem:[%s2660_s18 + $0x28] sm:$0xff]  ;;  %1523 = vst [vmem:[%s2545_s15] sm:$0xff] %v1522_v26   ;;  %v1527_v5 = vpack.c.bf16 %v941_v30, %v2657_v22  ;;  %v1532_v6 = vpack.c.bf16 %v943_v35, %v942_v32 }
 0x283   : > { %v974_v33 = vadd.f32 %v958_v31, %v941_v30  ;;  %987 = vst [vmem:[%s2660_s18] sm:$0xff] %v971_v27  ;;  %v975_v37 = vadd.f32 %v959_v34, %v942_v32  ;;  %v944_v38 = vld [vmem:[%s2594_s21 + $0x30] sm:$0xff]  ;;  %v945_v40 = vld [vmem:[%s2594_s21 + $0x38] sm:$0xff]  ;;  %v976_v41 = vadd.f32 %v960_v36, %v943_v35  ;;  %v946_v43 = vld [vmem:[%s2594_s21 + $0x40] sm:$0xff] }
 0x284   : > { %v961_v39 = vld [vmem:[%s2660_s18 + $0x30] sm:$0xff]  ;;  %988 = vst [vmem:[%s2660_s18 + $0x8] sm:$0xff] %v972_v28  ;;  %v962_v42 = vld [vmem:[%s2660_s18 + $0x38] sm:$0xff]  ;;  %v963_v44 = vld [vmem:[%s2660_s18 + $0x40] sm:$0xff]  ;;  %v1537_v7 = vpack.c.bf16 %v945_v40, %v944_v38 }
 0x285   : > { %989 = vst [vmem:[%s2660_s18 + $0x10] sm:$0xff] %v973_v29  ;;  %v977_v45 = vadd.f32 %v961_v39, %v944_v38  ;;  %v947_v46 = vld [vmem:[%s2594_s21 + $0x48] sm:$0xff]  ;;  %v978_v48 = vadd.f32 %v962_v42, %v945_v40  ;;  %v948_v49 = vld [vmem:[%s2594_s21 + $0x50] sm:$0xff]  ;;  %v979_v51 = vadd.f32 %v963_v44, %v946_v43  ;;  %v949_v52 = vld [vmem:[%s2594_s21 + $0x58] sm:$0xff] }
 0x286   : > { %v964_v47 = vld [vmem:[%s2660_s18 + $0x48] sm:$0xff]  ;;  %990 = vst [vmem:[%s2660_s18 + $0x18] sm:$0xff] %v974_v33  ;;  %v965_v50 = vld [vmem:[%s2660_s18 + $0x50] sm:$0xff]  ;;  %v966_v53 = vld [vmem:[%s2660_s18 + $0x58] sm:$0xff]  ;;  %v1542_v8 = vpack.c.bf16 %v947_v46, %v946_v43  ;;  %v1547_v9 = vpack.c.bf16 %v949_v52, %v948_v49 }
 0x287   : > { %991 = vst [vmem:[%s2660_s18 + $0x20] sm:$0xff] %v975_v37  ;;  %v980_v54 = vadd.f32 %v964_v47, %v947_v46  ;;  %v950_v55 = vld [vmem:[%s2594_s21 + $0x60] sm:$0xff]  ;;  %v981_v57 = vadd.f32 %v965_v50, %v948_v49  ;;  %v951_v58 = vld [vmem:[%s2594_s21 + $0x68] sm:$0xff]  ;;  %v982_v60 = vadd.f32 %v966_v53, %v949_v52  ;;  %v952_v61 = vld [vmem:[%s2594_s21 + $0x70] sm:$0xff] }
 0x288   : > { %992 = vst [vmem:[%s2660_s18 + $0x28] sm:$0xff] %v976_v41  ;;  %v967_v56 = vld [vmem:[%s2660_s18 + $0x60] sm:$0xff]  ;;  %v968_v59 = vld [vmem:[%s2660_s18 + $0x68] sm:$0xff]  ;;  %v969_v62 = vld [vmem:[%s2660_s18 + $0x70] sm:$0xff]  ;;  %v1552_v10 = vpack.c.bf16 %v951_v58, %v950_v55 }
 0x289   : > { %993 = vst [vmem:[%s2660_s18 + $0x30] sm:$0xff] %v977_v45  ;;  %v983_v63 = vadd.f32 %v967_v56, %v950_v55  ;;  %v953_v0 = vld [vmem:[%s2594_s21 + $0x78] sm:$0xff]  ;;  %v984_v2 = vadd.f32 %v968_v59, %v951_v58  ;;  %v985_v3 = vadd.f32 %v969_v62, %v952_v61 }
 0x28a   : > { %994 = vst [vmem:[%s2660_s18 + $0x38] sm:$0xff] %v978_v48  ;;  %v970_v1 = vld [vmem:[%s2660_s18 + $0x78] sm:$0xff]  ;;  %v1557_v11 = vpack.c.bf16 %v953_v0, %v952_v61 }
 0x28b   : > { %995 = vst [vmem:[%s2660_s18 + $0x40] sm:$0xff] %v979_v51  ;;  %v986_v4 = vadd.f32 %v970_v1, %v953_v0 }
 0x28c   : > { %996 = vst [vmem:[%s2660_s18 + $0x48] sm:$0xff] %v980_v54 }
 0x28d   : > { %997 = vst [vmem:[%s2660_s18 + $0x50] sm:$0xff] %v981_v57 }
 0x28e   : > { %998 = vst [vmem:[%s2660_s18 + $0x58] sm:$0xff] %v982_v60 }
 0x28f   : > { %999 = vst [vmem:[%s2660_s18 + $0x60] sm:$0xff] %v983_v63 }
 0x290   : > { %1000 = vst [vmem:[%s2660_s18 + $0x68] sm:$0xff] %v984_v2 }
 0x291   : > { %1001 = vst [vmem:[%s2660_s18 + $0x70] sm:$0xff] %v985_v3 }
 0x292   : > { %1002 = vst [vmem:[%s2660_s18 + $0x78] sm:$0xff] %v986_v4 }
 0x293   : > { %1599 = vst [vmem:[%s2545_s15 + $0x8] sm:$0xff] %v1527_v5  }
 0x294   : > { %1600 = vst [vmem:[%s2545_s15 + $0x10] sm:$0xff] %v1532_v6  }
 0x295   : > { %1601 = vst [vmem:[%s2545_s15 + $0x18] sm:$0xff] %v1537_v7  }
 0x296   : > { %1602 = vst [vmem:[%s2545_s15 + $0x20] sm:$0xff] %v1542_v8  }
 0x297   : > { %1603 = vst [vmem:[%s2545_s15 + $0x28] sm:$0xff] %v1547_v9  }
 0x298   : > { %1604 = vst [vmem:[%s2545_s15 + $0x30] sm:$0xff] %v1552_v10  }
 0x299   : > { %1605 = vst [vmem:[%s2545_s15 + $0x38] sm:$0xff] %v1557_v11  }
 0x29a PF: > { %p1035_p2 = scmp.eq.s32.totalorder %s2144_s7, 1 }
 0x29c   : > { %p1036_p3 = pnand %p1035_p2, %p932_p11 }
 0x29d   : > { %s2726_s20 = scalar_lea.vmem (!%p1036_p3), [#allocation11], %s2451_s17 }
 0x29e   : > { %1039 = sbr.rel (%p1036_p3) target bundleno = 702 (0x2be), region = 68 }
 0x2a3   : > { %v1040_v12 = vld [vmem:[%s2575_s16] sm:$0xff]  ;;  %v1041_v13 = vld [vmem:[%s2575_s16 + $0x8] sm:$0xff]  ;;  %v2723_v14 = vld [vmem:[%s2575_s16 + $0x10] sm:$0xff] }
 0x2a4   : > { %v1057_v15 = vld [vmem:[%s2726_s20] sm:$0xff]  ;;  %v1058_v16 = vld [vmem:[%s2726_s20 + $0x8] sm:$0xff]  ;;  %v1059_v17 = vld [vmem:[%s2726_s20 + $0x10] sm:$0xff]  ;;  %v1562_v18 = vpack.c.bf16 %v1041_v13, %v1040_v12 }
 0x2a5   : > { %v1073_v19 = vadd.f32 %v1057_v15, %v1040_v12  ;;  %v1074_v20 = vadd.f32 %v1058_v16, %v1041_v13  ;;  %v1075_v21 = vadd.f32 %v1059_v17, %v2723_v14  ;;  %v1043_v22 = vld [vmem:[%s2575_s16 + $0x18] sm:$0xff]  ;;  %v1044_v24 = vld [vmem:[%s2575_s16 + $0x20] sm:$0xff]  ;;  %v1045_v27 = vld [vmem:[%s2575_s16 + $0x28] sm:$0xff] }
 0x2a6   : > { %v1060_v23 = vld [vmem:[%s2726_s20 + $0x18] sm:$0xff]  ;;  %v1061_v26 = vld [vmem:[%s2726_s20 + $0x20] sm:$0xff]  ;;  %v1062_v28 = vld [vmem:[%s2726_s20 + $0x28] sm:$0xff]  ;;  %1563 = vst [vmem:[%s2558_s27] sm:$0xff] %v1562_v18   ;;  %v1567_v61 = vpack.c.bf16 %v1043_v22, %v2723_v14  ;;  %v1572_v62 = vpack.c.bf16 %v1045_v27, %v1044_v24 }
 0x2a7   : > { %v1076_v25 = vadd.f32 %v1060_v23, %v1043_v22  ;;  %1089 = vst [vmem:[%s2726_s20] sm:$0xff] %v1073_v19  ;;  %v1077_v29 = vadd.f32 %v1061_v26, %v1044_v24  ;;  %v1046_v30 = vld [vmem:[%s2575_s16 + $0x30] sm:$0xff]  ;;  %v1047_v32 = vld [vmem:[%s2575_s16 + $0x38] sm:$0xff]  ;;  %v1078_v33 = vadd.f32 %v1062_v28, %v1045_v27  ;;  %v1048_v35 = vld [vmem:[%s2575_s16 + $0x40] sm:$0xff] }
 0x2a8   : > { %v1063_v31 = vld [vmem:[%s2726_s20 + $0x30] sm:$0xff]  ;;  %1090 = vst [vmem:[%s2726_s20 + $0x8] sm:$0xff] %v1074_v20  ;;  %v1064_v34 = vld [vmem:[%s2726_s20 + $0x38] sm:$0xff]  ;;  %v1065_v36 = vld [vmem:[%s2726_s20 + $0x40] sm:$0xff]  ;;  %v1577_v63 = vpack.c.bf16 %v1047_v32, %v1046_v30 }
 0x2a9   : > { %1091 = vst [vmem:[%s2726_s20 + $0x10] sm:$0xff] %v1075_v21  ;;  %v1079_v37 = vadd.f32 %v1063_v31, %v1046_v30  ;;  %v1049_v38 = vld [vmem:[%s2575_s16 + $0x48] sm:$0xff]  ;;  %v1080_v40 = vadd.f32 %v1064_v34, %v1047_v32  ;;  %v1050_v41 = vld [vmem:[%s2575_s16 + $0x50] sm:$0xff]  ;;  %v1081_v43 = vadd.f32 %v1065_v36, %v1048_v35  ;;  %v1051_v44 = vld [vmem:[%s2575_s16 + $0x58] sm:$0xff] }
 0x2aa   : > { %v1066_v39 = vld [vmem:[%s2726_s20 + $0x48] sm:$0xff]  ;;  %1092 = vst [vmem:[%s2726_s20 + $0x18] sm:$0xff] %v1076_v25  ;;  %v1067_v42 = vld [vmem:[%s2726_s20 + $0x50] sm:$0xff]  ;;  %v1068_v45 = vld [vmem:[%s2726_s20 + $0x58] sm:$0xff]  ;;  %v1582_v0 = vpack.c.bf16 %v1049_v38, %v1048_v35  ;;  %v1587_v1 = vpack.c.bf16 %v1051_v44, %v1050_v41 }
 0x2ab   : > { %1093 = vst [vmem:[%s2726_s20 + $0x20] sm:$0xff] %v1077_v29  ;;  %v1082_v46 = vadd.f32 %v1066_v39, %v1049_v38  ;;  %v1052_v47 = vld [vmem:[%s2575_s16 + $0x60] sm:$0xff]  ;;  %v1083_v49 = vadd.f32 %v1067_v42, %v1050_v41  ;;  %v1053_v50 = vld [vmem:[%s2575_s16 + $0x68] sm:$0xff]  ;;  %v1084_v52 = vadd.f32 %v1068_v45, %v1051_v44  ;;  %v1054_v53 = vld [vmem:[%s2575_s16 + $0x70] sm:$0xff] }
 0x2ac   : > { %1094 = vst [vmem:[%s2726_s20 + $0x28] sm:$0xff] %v1078_v33  ;;  %v1069_v48 = vld [vmem:[%s2726_s20 + $0x60] sm:$0xff]  ;;  %v1070_v51 = vld [vmem:[%s2726_s20 + $0x68] sm:$0xff]  ;;  %v1071_v54 = vld [vmem:[%s2726_s20 + $0x70] sm:$0xff]  ;;  %v1592_v2 = vpack.c.bf16 %v1053_v50, %v1052_v47 }
 0x2ad   : > { %1095 = vst [vmem:[%s2726_s20 + $0x30] sm:$0xff] %v1079_v37  ;;  %v1085_v55 = vadd.f32 %v1069_v48, %v1052_v47  ;;  %v1055_v56 = vld [vmem:[%s2575_s16 + $0x78] sm:$0xff]  ;;  %v1086_v58 = vadd.f32 %v1070_v51, %v1053_v50  ;;  %v1087_v59 = vadd.f32 %v1071_v54, %v1054_v53 }
 0x2ae   : > { %1096 = vst [vmem:[%s2726_s20 + $0x38] sm:$0xff] %v1080_v40  ;;  %v1072_v57 = vld [vmem:[%s2726_s20 + $0x78] sm:$0xff]  ;;  %v1597_v3 = vpack.c.bf16 %v1055_v56, %v1054_v53 }
 0x2af   : > { %1097 = vst [vmem:[%s2726_s20 + $0x40] sm:$0xff] %v1081_v43  ;;  %v1088_v60 = vadd.f32 %v1072_v57, %v1055_v56 }
 0x2b0   : > { %1098 = vst [vmem:[%s2726_s20 + $0x48] sm:$0xff] %v1082_v46 }
 0x2b1   : > { %1099 = vst [vmem:[%s2726_s20 + $0x50] sm:$0xff] %v1083_v49 }
 0x2b2   : > { %1100 = vst [vmem:[%s2726_s20 + $0x58] sm:$0xff] %v1084_v52 }
 0x2b3   : > { %1101 = vst [vmem:[%s2726_s20 + $0x60] sm:$0xff] %v1085_v55 }
 0x2b4   : > { %1102 = vst [vmem:[%s2726_s20 + $0x68] sm:$0xff] %v1086_v58 }
 0x2b5   : > { %1103 = vst [vmem:[%s2726_s20 + $0x70] sm:$0xff] %v1087_v59 }
 0x2b6   : > { %1104 = vst [vmem:[%s2726_s20 + $0x78] sm:$0xff] %v1088_v60 }
 0x2b7   : > { %1606 = vst [vmem:[%s2558_s27 + $0x8] sm:$0xff] %v1567_v61  }
 0x2b8   : > { %1607 = vst [vmem:[%s2558_s27 + $0x10] sm:$0xff] %v1572_v62  }
 0x2b9   : > { %1608 = vst [vmem:[%s2558_s27 + $0x18] sm:$0xff] %v1577_v63  }
 0x2ba   : > { %1609 = vst [vmem:[%s2558_s27 + $0x20] sm:$0xff] %v1582_v0  }
 0x2bb   : > { %1610 = vst [vmem:[%s2558_s27 + $0x28] sm:$0xff] %v1587_v1  }
 0x2bc   : > { %1611 = vst [vmem:[%s2558_s27 + $0x30] sm:$0xff] %v1592_v2  }
 0x2bd   : > { %1612 = vst [vmem:[%s2558_s27 + $0x38] sm:$0xff] %v1597_v3  }
 0x2be PF: > { %p1663_p8 = scmp.eq.s32.totalorder %s2293_s13, 11  ;;  %s2173_s7 = smov [#allocation11]  }
 0x2bf   : > { %s1156_s17 = sshll.u32 %s2173_s7, 4  ;;  %s2925_s8 = sld [smem:[#allocation35_spill]]  ;;  %s1157_s17 = int_to_ptr.vmem [resolvable:$true] %s1156_s17 }
 0x2c0   : > { %s2174_s3 = smov 128   ;;  %s2175_s19 = smov 8  }
 0x2c1   : > { %s2176_s5 = smov [#allocation10]   ;;  %s2926_s27 = sld [smem:[#allocation34_spill]] }
 0x2c2   : > { %s1142_s15 = sshll.u32 %s2176_s5, 4  ;;  %s2927_s24 = sld [smem:[#allocation36_spill]]  ;;  %s1143_s15 = int_to_ptr.vmem [resolvable:$true] %s1142_s15 }
 0x2c3   : > { %s2177_s18 = smov [#allocation13]   ;;  %s2178_s20 = smov [#allocation14]  }
 0x2c4   : > { %s1170_s10 = sshll.u32 %s2177_s18, 4  ;;  %s1184_s7 = sshll.u32 %s2178_s20, 4  ;;  %s1171_s10 = int_to_ptr.vmem [resolvable:$true] %s1170_s10  ;;  %s1185_s7 = int_to_ptr.vmem [resolvable:$true] %s1184_s7 }
 0x2c5   : > { %s1158_s14 = sshll.u32 %s2925_s8, 4  ;;  %s2928_s26 = sld [smem:[#allocation37_spill]]  ;;  %s1159_s14 = int_to_ptr.hbm [resolvable:$true] %s1158_s14 }
 0x2c6   : > { %1639 = dma.vmem_to_hbm [thread:$0]  (%p1663_p8), %s1157_s17, 6144, %s1159_s14, [#allocation12], %s2174_s3, %s2174_s3, %s2175_s19  }
 0x2c7   : > { %s1144_s30 = sshll.u32 %s2926_s27, 4  ;;  %s1145_s30 = int_to_ptr.hbm [resolvable:$true] %s1144_s30 }
 0x2c8   : > { %1637 = dma.vmem_to_hbm [thread:$0]  (%p1663_p8), %s1143_s15, 4096, %s1145_s30, [#allocation6], %s2174_s3, %s2174_s3, %s2175_s19  }
 0x2c9   : > { %s1172_s21 = sshll.u32 %s2927_s24, 4  ;;  %s1173_s21 = int_to_ptr.hbm [resolvable:$true] %s1172_s21 }
 0x2ca   : > { %1641 = dma.vmem_to_hbm [thread:$0]  (%p1663_p8), %s1171_s10, 4096, %s1173_s21, [#allocation12], %s2174_s3, %s2174_s3, %s2175_s19  }
 0x2cb   : > { %s1186_s8 = sshll.u32 %s2928_s26, 4  ;;  %s1187_s8 = int_to_ptr.hbm [resolvable:$true] %s1186_s8 }
 0x2cc   : > { %1643 = dma.vmem_to_hbm [thread:$0]  (%p1663_p8), %s1185_s7, 6144, %s1187_s8, [#allocation15], %s2174_s3, %s2174_s3, %s2175_s19  }
 0x2cd   : > { %2091 = dma.done.wait (%p1663_p8), [#allocation6], 4096  }
 0x2ce   : > { %2093 = vsyncadd (%p1663_p8), [#allocation6], 4294963200 }
 0x2cf   : > { %2095 = dma.done.wait (%p1663_p8), [#allocation12], 10240  }
 0x2d0   : > { %2097 = vsyncadd (%p1663_p8), [#allocation12], 4294957056 }
 0x2d1   : > { %2099 = dma.done.wait (%p1663_p8), [#allocation15], 6144  }
 0x2d2   : > { %2101 = vsyncadd (%p1663_p8), [#allocation15], 4294961152 }
 0x2d3 PF: > { %s26_s12 = sadd.s32 1, %s2164_s12   ;;  %s2930_s3 = sld [smem:[#allocation22_spill]] }
 0x2d4   : > { %p2817_p0 = scmp.ge.s32.totalorder %s26_s12, 14   ;;  %s2931_s26 = sld [smem:[#allocation32_spill]] }
 0x2d5   : > { %s2932_s19 = sld [smem:[#allocation23_spill]]  ;;  %s2939_s21 = smov %s2108_s22 }
 0x2d6   : > { %s2933_s29 = sld [smem:[#allocation31_spill]]  ;;  %s2940_s22 = smov %s2112_s23 }
 0x2d7   : > { %s2934_s7 = sld [smem:[#allocation26_spill]]  ;;  %s2941_s23 = smov %s2400_s11 }
 0x2d8   : > { %s2935_s8 = sld [smem:[#allocation27_spill]]  ;;  %s2942_s24 = smov %s2120_s25 }
 0x2d9   : > { %s2936_s13 = sld [smem:[#allocation28_spill]]  ;;  %s2943_s25 = smov %s2930_s3 }
 0x2da   : > { %s2937_s10 = sld [smem:[#allocation29_spill]]  ;;  %s2944_s27 = smov %s2132_s28 }
 0x2db   : > { %s2938_s5 = sld [smem:[#allocation30_spill]]  ;;  %s2945_s28 = smov %s2932_s19 }
 0x2dc   : > { %s2946_s30 = smov %s2152_s9 }
 0x2dd   :  { %25 = sbr.rel (!%p2817_p0) target bundleno = 20 (0x14), region = 153 }
 0x2df   : > { %s2947_s9 = smov %s2936_s13 }
 0x2e1   : > { %s2948_s11 = smov %s2938_s5 }
 0x2e2   :  { %1218 = vsyncpa [#allocation5], 1 }
 0x2e3   :  { %1220 = vsyncpa [#allocation5 + $0x1], 1 }
 0x2e4   :  { %1221 = vsyncpa [#allocation8], 1 }
 0x2e5   :  { %1223 = vsyncpa [#allocation8 + $0x1], 1 }
 0x2e6   :  { %1224 = vsyncpa [#allocation6], 1 }
 0x2e7   :  { %1226 = vsyncpa [#allocation6 + $0x1], 1 }
 0x2e8   :  { %1227 = vsyncpa [#allocation12], 1 }
 0x2e9   :  { %1228 = vsyncpa [#allocation15], 1 }

</bundles_post_ra>
